<compile_context>
chip_gen: v7x
topology: tpu7x:2x2x1
jax: 0.10.0
libtpu: 0.0.40
codegen_flags: <defaults>
</compile_context>

<pallas_src>
import jax
import jax.numpy as jnp
from jax import lax
from jax.experimental import pallas as pl
from jax.experimental.pallas import tpu as pltpu

D_EMB = 50      # input feature size
HID = 32        # RNN hidden size
T_HALF = 30     # timesteps per RNN call


def rnn_kernel(x_ref,      # (30, BT, 100) time-major, lanes = [x_half1 | x_half2]
               wih_ref,    # (100, 128)    block-diag input projection, both dirs
               bcat_ref,   # (1, 128)      [b_f, b_f, b_b, b_b]  (b_* = b_ih + b_hh)
               whh_ref,    # (64, 64)      block-diag(W_hh_f^T, W_hh_f^T)
               w1a_ref,    # (64, 32)      W1^T rows for [h1_fwd | h2_fwd]
               w1b_ref,    # (64, 32)      W1^T rows for [h1_bwd | h2_bwd]
               b1_ref,     # (1, 32)
               w2_ref,     # (32, 1)
               b2_ref,     # (1, 1)
               out_ref,    # (BT, 1)
               proj_ref):  # VMEM scratch (30, BT, 128), lane-dense projection
    T, BT, DP = x_ref.shape

    # ---- Hoisted input projection: one dense MXU matmul covering all 30
    #      steps, both halves and both directions, biases folded in.
    x_all = x_ref[...].reshape(T * BT, DP)
    proj = (jnp.dot(x_all, wih_ref[...], preferred_element_type=jnp.float32)
            + bcat_ref[...])
    proj_ref[...] = proj.reshape(T, BT, 4 * HID)

    # ---- Forward-direction recurrence; both halves advance together on the
    #      lane axis: 30 dependent steps of tanh(p_t + h @ blockdiag(W_hh)).
    whh = whh_ref[...]

    def step(t, h):
        hm = h.astype(whh.dtype)   # no-op in f32; bf16 MXU operand if requested
        return jnp.tanh(proj_ref[t, :, 0:2 * HID]
                        + jnp.dot(hm, whh, preferred_element_type=jnp.float32))

    h_fwd = lax.fori_loop(0, T, step, jnp.zeros((BT, 2 * HID), jnp.float32),
                          unroll=True)                       # (BT,64) = [h1_fwd|h2_fwd]

    # ---- Backward-direction output at each half's last timestep: one tanh
    #      step from zero hidden state, already present in the projection.
    h_bwd = jnp.tanh(proj_ref[T - 1, :, 2 * HID:4 * HID])    # (BT,64) = [h1_bwd|h2_bwd]

    # ---- Head: W1 rows pre-permuted host-side to the kernel lane layout, so
    #      relu(Linear(128->32)) is two K=64 dots summed (no concat/slicing).
    z = jnp.maximum(
        jnp.dot(h_fwd, w1a_ref[...], preferred_element_type=jnp.float32)
        + jnp.dot(h_bwd, w1b_ref[...], preferred_element_type=jnp.float32)
        + b1_ref[...], 0.0)
    y = jnp.dot(z, w2_ref[...], preferred_element_type=jnp.float32) + b2_ref[...]
    out_ref[...] = jax.nn.sigmoid(y)


def _round_up(n, m):
    return -(-n // m) * m


def init_params(key):
    """Deterministic parameters with PyTorch-module shapes."""
    ks = jax.random.split(key, 12)
    bound_rnn = 1.0 / jnp.sqrt(HID)
    bound_l1 = 1.0 / jnp.sqrt(4 * HID)
    bound_l2 = 1.0 / jnp.sqrt(HID)
    u = lambda k, s, b: jax.random.uniform(k, s, jnp.float32, -b, b)
    return dict(
        weight_ih_f=u(ks[0], (HID, D_EMB), bound_rnn),
        weight_hh_f=u(ks[1], (HID, HID), bound_rnn),
        bias_ih_f=u(ks[2], (HID,), bound_rnn),
        bias_hh_f=u(ks[3], (HID,), bound_rnn),
        weight_ih_b=u(ks[4], (HID, D_EMB), bound_rnn),
        weight_hh_b=u(ks[5], (HID, HID), bound_rnn),  # multiplies zero state -> unused
        bias_ih_b=u(ks[6], (HID,), bound_rnn),
        bias_hh_b=u(ks[7], (HID,), bound_rnn),
        w1=u(ks[8], (HID, 4 * HID), bound_l1),
        b1=u(ks[9], (HID,), bound_l1),
        w2=u(ks[10], (1, HID), bound_l2),
        b2=u(ks[11], (1,), bound_l2),
    )


def rnn_forward(x, p, *, batch_tile=None, mxu_bf16=False):
    """x: (B, T>=60, 50) float32 -> (B, 1) float32 (PyTorch forward semantics)."""
    B = x.shape[0]
    x = x[:, :2 * T_HALF, :].astype(jnp.float32)

    # Batch padding / tiling: multiple of 8 (f32 sublanes).  Default tile
    # yields >= 2 grid steps whenever B > 8 so both v7x TensorCores are used.
    b8 = _round_up(max(B, 1), 8)
    if batch_tile is None:
        batch_tile = b8 if b8 <= 8 else min(128, _round_up(-(-b8 // 2), 8))
    batch_tile = _round_up(batch_tile, 8)
    b_pad = _round_up(b8, batch_tile)
    if b_pad != B:
        x = jnp.pad(x, ((0, b_pad - B), (0, 0), (0, 0)))

    # Lane-pack the two 30-step halves: (b, 60, 50) -> (30, b, 100).
    x_pk = jnp.concatenate([x[:, :T_HALF, :], x[:, T_HALF:, :]], axis=-1)
    x_stk = jnp.transpose(x_pk, (1, 0, 2))

    # Block-diagonal input projection (100, 128): output lanes are
    # [h1_fwd | h2_fwd | h1_bwd | h2_bwd]; both biases (ih + hh) folded in.
    z_dh = jnp.zeros((D_EMB, HID), jnp.float32)
    wf, wb = p["weight_ih_f"].T, p["weight_ih_b"].T                     # (50, 32)
    wih = jnp.concatenate(
        [jnp.concatenate([wf, z_dh, wb, z_dh], axis=1),
         jnp.concatenate([z_dh, wf, z_dh, wb], axis=1)], axis=0)        # (100, 128)
    bf = p["bias_ih_f"] + p["bias_hh_f"]
    bb = p["bias_ih_b"] + p["bias_hh_b"]
    bcat = jnp.concatenate([bf, bf, bb, bb]).reshape(1, 4 * HID)        # (1, 128)

    # Block-diagonal recurrent weight (64, 64): both halves step together.
    z_hh = jnp.zeros((HID, HID), jnp.float32)
    whh_t = p["weight_hh_f"].T
    whh = jnp.concatenate(
        [jnp.concatenate([whh_t, z_hh], axis=1),
         jnp.concatenate([z_hh, whh_t], axis=1)], axis=0)               # (64, 64)

    # Head weight rows permuted to the kernel's natural lane layout.
    w1t = p["w1"].T                                  # (128, 32) rows [h1f, h1b, h2f, h2b]
    w1a = jnp.concatenate([w1t[0:HID], w1t[2 * HID:3 * HID]], axis=0)   # rows [h1f, h2f]
    w1b = jnp.concatenate([w1t[HID:2 * HID], w1t[3 * HID:]], axis=0)    # rows [h1b, h2b]

    if mxu_bf16:
        # v6e / v7x option: bf16 MXU operands on the recurrence path; adds,
        # tanh and accumulation remain f32 (preferred_element_type).
        x_stk = x_stk.astype(jnp.bfloat16)
        wih = wih.astype(jnp.bfloat16)
        whh = whh.astype(jnp.bfloat16)

    args = (x_stk, wih, bcat, whh, w1a, w1b,
            p["b1"].reshape(1, HID), p["w2"].T, p["b2"].reshape(1, 1))

    BT = batch_tile
    grid_spec = pltpu.PrefetchScalarGridSpec(
        num_scalar_prefetch=0,
        grid=(b_pad // BT,),
        in_specs=[
            pl.BlockSpec((T_HALF, BT, 2 * D_EMB), lambda i: (0, i, 0)),
            pl.BlockSpec((2 * D_EMB, 4 * HID), lambda i: (0, 0)),
            pl.BlockSpec((1, 4 * HID), lambda i: (0, 0)),
            pl.BlockSpec((2 * HID, 2 * HID), lambda i: (0, 0)),
            pl.BlockSpec((2 * HID, HID), lambda i: (0, 0)),
            pl.BlockSpec((2 * HID, HID), lambda i: (0, 0)),
            pl.BlockSpec((1, HID), lambda i: (0, 0)),
            pl.BlockSpec((HID, 1), lambda i: (0, 0)),
            pl.BlockSpec((1, 1), lambda i: (0, 0)),
        ],
        out_specs=pl.BlockSpec((BT, 1), lambda i: (i, 0)),
        scratch_shapes=[pltpu.VMEM((T_HALF, BT, 4 * HID), jnp.float32)],
    )
    out = pl.pallas_call(
        rnn_kernel,
        out_shape=jax.ShapeDtypeStruct((b_pad, 1), jnp.float32),
        grid_spec=grid_spec,
        compiler_params=pltpu.CompilerParams(
            dimension_semantics=("parallel",)),
    )(*args)
    return out[:B]


def rnn_forward_ref(x, p):
    """Pure-JAX reference matching torch.nn.RNN(bidirectional=True) semantics."""
    x = x[:, :60, :].astype(jnp.float32)
    B = x.shape[0]

    def run_half(xs):  # xs: (B, 30, 50)
        def step(h, xt):
            h = jnp.tanh(xt @ p["weight_ih_f"].T + p["bias_ih_f"]
                         + h @ p["weight_hh_f"].T + p["bias_hh_f"])
            return h, None
        h_fwd, _ = lax.scan(step, jnp.zeros((B, HID), jnp.float32),
                            jnp.transpose(xs, (1, 0, 2)))
        # backward-direction output at the last timestep: one step from zero h
        h_bwd = jnp.tanh(xs[:, -1] @ p["weight_ih_b"].T + p["bias_ih_b"]
                         + p["bias_hh_b"])
        return jnp.concatenate([h_fwd, h_bwd], axis=1)

    o1 = run_half(x[:, :30])
    o2 = run_half(x[:, 30:60])
    comb = jnp.concatenate([o1, o2], axis=1)                    # (B, 128)
    z = jnp.maximum(comb @ p["w1"].T + p["b1"], 0.0)
    return jax.nn.sigmoid(z @ p["w2"].T + p["b2"])


if __name__ == "__main__":
    key = jax.random.PRNGKey(0)
    kx, kp = jax.random.split(key)
    B, T = 2, 60
    x = jax.random.normal(kx, (B, T, D_EMB), dtype=jnp.float32)
    params = init_params(kp)

    y = jax.block_until_ready(rnn_forward(x, params))
    y_ref = rnn_forward_ref(x, params)

    assert y.shape == (B, 1)
    assert bool(jnp.all(jnp.isfinite(y)))
    assert bool(jnp.allclose(y, y_ref, rtol=2e-3, atol=2e-3)), (y, y_ref)

    print("KERNEL_OK")
</pallas_src>

<mosaic_0001>
module attributes {stable_mosaic.version = 11 : i64} {
  func.func @rnn_kernel(%arg0: i32, %arg1: memref<30x8x100xf32, #tpu.memory_space<vmem>>, %arg2: memref<100x128xf32, #tpu.memory_space<vmem>>, %arg3: memref<1x128xf32, #tpu.memory_space<vmem>>, %arg4: memref<64x64xf32, #tpu.memory_space<vmem>>, %arg5: memref<64x32xf32, #tpu.memory_space<vmem>>, %arg6: memref<64x32xf32, #tpu.memory_space<vmem>>, %arg7: memref<1x32xf32, #tpu.memory_space<vmem>>, %arg8: memref<32x1xf32, #tpu.memory_space<vmem>>, %arg9: memref<1x1xf32, #tpu.memory_space<vmem>>, %arg10: memref<8x1xf32, #tpu.memory_space<vmem>>, %arg11: memref<30x8x128xf32, #tpu.memory_space<vmem>>) attributes {dimension_semantics = [#tpu.dimension_semantics<parallel>], iteration_bounds = array<i64: 1>, scalar_prefetch = 0 : i64, scratch_operands = 1 : i64, tpu.core_type = #tpu.core_type<tc>, window_params = [{transform_indices = @transform_0, window_bounds = array<i64: 30, 8, 100>}, {pipeline_mode = #tpu.pipeline_mode<synchronous>, transform_indices = @transform_1, window_bounds = array<i64: 100, 128>}, {pipeline_mode = #tpu.pipeline_mode<synchronous>, transform_indices = @transform_2, window_bounds = array<i64: 1, 128>}, {pipeline_mode = #tpu.pipeline_mode<synchronous>, transform_indices = @transform_3, window_bounds = array<i64: 64, 64>}, {pipeline_mode = #tpu.pipeline_mode<synchronous>, transform_indices = @transform_4, window_bounds = array<i64: 64, 32>}, {pipeline_mode = #tpu.pipeline_mode<synchronous>, transform_indices = @transform_5, window_bounds = array<i64: 64, 32>}, {pipeline_mode = #tpu.pipeline_mode<synchronous>, transform_indices = @transform_6, window_bounds = array<i64: 1, 32>}, {pipeline_mode = #tpu.pipeline_mode<synchronous>, transform_indices = @transform_7, window_bounds = array<i64: 32, 1>}, {pipeline_mode = #tpu.pipeline_mode<synchronous>, transform_indices = @transform_8, window_bounds = array<i64: 1, 1>}, {transform_indices = @transform_9, window_bounds = array<i64: 8, 1>}]} {
    %c0 = arith.constant 0 : index
    %c0_0 = arith.constant 0 : index
    %c0_1 = arith.constant 0 : index
    %0 = vector.load %arg1[%c0, %c0_0, %c0_1] : memref<30x8x100xf32, #tpu.memory_space<vmem>>, vector<30x8x100xf32>
    %1 = vector.shape_cast %0 : vector<30x8x100xf32> to vector<240x100xf32>
    %c0_2 = arith.constant 0 : index
    %c0_3 = arith.constant 0 : index
    %2 = vector.load %arg2[%c0_2, %c0_3] : memref<100x128xf32, #tpu.memory_space<vmem>>, vector<100x128xf32>
    %cst = arith.constant dense<0.000000e+00> : vector<240x128xf32>
    %3 = tpu.matmul %1, %2, %cst {dimension_numbers = #tpu.dot_dimension_numbers<[1], [0], [0], [1], [0, 0, 1, 1], [], []>} : vector<240x100xf32>, vector<100x128xf32>, vector<240x128xf32> -> vector<240x128xf32>
    %c0_4 = arith.constant 0 : index
    %c0_5 = arith.constant 0 : index
    %4 = vector.load %arg3[%c0_4, %c0_5] : memref<1x128xf32, #tpu.memory_space<vmem>>, vector<1x128xf32>
    %5 = vector.broadcast %4 : vector<1x128xf32> to vector<240x128xf32>
    %6 = arith.addf %3, %5 : vector<240x128xf32>
    %7 = vector.shape_cast %6 : vector<240x128xf32> to vector<30x8x128xf32>
    %c0_6 = arith.constant 0 : index
    %c0_7 = arith.constant 0 : index
    %c0_8 = arith.constant 0 : index
    %8 = vector.load %arg11[%c0_6, %c0_7, %c0_8] : memref<30x8x128xf32, #tpu.memory_space<vmem>>, vector<30x8x128xf32>
    tpu.vector_store %arg11[%c0_6, %c0_7, %c0_8], %7 {strides = array<i32>} : memref<30x8x128xf32, #tpu.memory_space<vmem>>, vector<30x8x128xf32>,
    %c0_9 = arith.constant 0 : index
    %c0_10 = arith.constant 0 : index
    %9 = vector.load %arg4[%c0_9, %c0_10] : memref<64x64xf32, #tpu.memory_space<vmem>>, vector<64x64xf32>
    %cst_11 = arith.constant 0.000000e+00 : f32
    %10 = vector.broadcast %cst_11 : f32 to vector<8x64xf32>
    %c0_i32 = arith.constant 0 : i32
    %11 = arith.index_cast %c0_i32 : i32 to index
    %c0_12 = arith.constant 0 : index
    %c0_13 = arith.constant 0 : index
    %12 = vector.load %arg11[%11, %c0_12, %c0_13] : memref<30x8x128xf32, #tpu.memory_space<vmem>>, vector<1x8x64xf32>
    %13 = vector.shape_cast %12 : vector<1x8x64xf32> to vector<8x64xf32>
    %cst_14 = arith.constant dense<0.000000e+00> : vector<8x64xf32>
    %14 = tpu.matmul %10, %9, %cst_14 {dimension_numbers = #tpu.dot_dimension_numbers<[1], [0], [0], [1], [0, 0, 1, 1], [], []>} : vector<8x64xf32>, vector<64x64xf32>, vector<8x64xf32> -> vector<8x64xf32>
    %15 = arith.addf %13, %14 : vector<8x64xf32>
    %16 = math.tanh %15 : vector<8x64xf32>
    %c1_i32 = arith.constant 1 : i32
    %17 = arith.index_cast %c1_i32 : i32 to index
    %c0_15 = arith.constant 0 : index
    %c0_16 = arith.constant 0 : index
    %18 = vector.load %arg11[%17, %c0_15, %c0_16] : memref<30x8x128xf32, #tpu.memory_space<vmem>>, vector<1x8x64xf32>
    %19 = vector.shape_cast %18 : vector<1x8x64xf32> to vector<8x64xf32>
    %cst_17 = arith.constant dense<0.000000e+00> : vector<8x64xf32>
    %20 = tpu.matmul %16, %9, %cst_17 {dimension_numbers = #tpu.dot_dimension_numbers<[1], [0], [0], [1], [0, 0, 1, 1], [], []>} : vector<8x64xf32>, vector<64x64xf32>, vector<8x64xf32> -> vector<8x64xf32>
    %21 = arith.addf %19, %20 : vector<8x64xf32>
    %22 = math.tanh %21 : vector<8x64xf32>
    %c2_i32 = arith.constant 2 : i32
    %23 = arith.index_cast %c2_i32 : i32 to index
    %c0_18 = arith.constant 0 : index
    %c0_19 = arith.constant 0 : index
    %24 = vector.load %arg11[%23, %c0_18, %c0_19] : memref<30x8x128xf32, #tpu.memory_space<vmem>>, vector<1x8x64xf32>
    %25 = vector.shape_cast %24 : vector<1x8x64xf32> to vector<8x64xf32>
    %cst_20 = arith.constant dense<0.000000e+00> : vector<8x64xf32>
    %26 = tpu.matmul %22, %9, %cst_20 {dimension_numbers = #tpu.dot_dimension_numbers<[1], [0], [0], [1], [0, 0, 1, 1], [], []>} : vector<8x64xf32>, vector<64x64xf32>, vector<8x64xf32> -> vector<8x64xf32>
    %27 = arith.addf %25, %26 : vector<8x64xf32>
    %28 = math.tanh %27 : vector<8x64xf32>
    %c3_i32 = arith.constant 3 : i32
    %29 = arith.index_cast %c3_i32 : i32 to index
    %c0_21 = arith.constant 0 : index
    %c0_22 = arith.constant 0 : index
    %30 = vector.load %arg11[%29, %c0_21, %c0_22] : memref<30x8x128xf32, #tpu.memory_space<vmem>>, vector<1x8x64xf32>
    %31 = vector.shape_cast %30 : vector<1x8x64xf32> to vector<8x64xf32>
    %cst_23 = arith.constant dense<0.000000e+00> : vector<8x64xf32>
    %32 = tpu.matmul %28, %9, %cst_23 {dimension_numbers = #tpu.dot_dimension_numbers<[1], [0], [0], [1], [0, 0, 1, 1], [], []>} : vector<8x64xf32>, vector<64x64xf32>, vector<8x64xf32> -> vector<8x64xf32>
    %33 = arith.addf %31, %32 : vector<8x64xf32>
    %34 = math.tanh %33 : vector<8x64xf32>
    %c4_i32 = arith.constant 4 : i32
    %35 = arith.index_cast %c4_i32 : i32 to index
    %c0_24 = arith.constant 0 : index
    %c0_25 = arith.constant 0 : index
    %36 = vector.load %arg11[%35, %c0_24, %c0_25] : memref<30x8x128xf32, #tpu.memory_space<vmem>>, vector<1x8x64xf32>
    %37 = vector.shape_cast %36 : vector<1x8x64xf32> to vector<8x64xf32>
    %cst_26 = arith.constant dense<0.000000e+00> : vector<8x64xf32>
    %38 = tpu.matmul %34, %9, %cst_26 {dimension_numbers = #tpu.dot_dimension_numbers<[1], [0], [0], [1], [0, 0, 1, 1], [], []>} : vector<8x64xf32>, vector<64x64xf32>, vector<8x64xf32> -> vector<8x64xf32>
    %39 = arith.addf %37, %38 : vector<8x64xf32>
    %40 = math.tanh %39 : vector<8x64xf32>
    %c5_i32 = arith.constant 5 : i32
    %41 = arith.index_cast %c5_i32 : i32 to index
    %c0_27 = arith.constant 0 : index
    %c0_28 = arith.constant 0 : index
    %42 = vector.load %arg11[%41, %c0_27, %c0_28] : memref<30x8x128xf32, #tpu.memory_space<vmem>>, vector<1x8x64xf32>
    %43 = vector.shape_cast %42 : vector<1x8x64xf32> to vector<8x64xf32>
    %cst_29 = arith.constant dense<0.000000e+00> : vector<8x64xf32>
    %44 = tpu.matmul %40, %9, %cst_29 {dimension_numbers = #tpu.dot_dimension_numbers<[1], [0], [0], [1], [0, 0, 1, 1], [], []>} : vector<8x64xf32>, vector<64x64xf32>, vector<8x64xf32> -> vector<8x64xf32>
    %45 = arith.addf %43, %44 : vector<8x64xf32>
    %46 = math.tanh %45 : vector<8x64xf32>
    %c6_i32 = arith.constant 6 : i32
    %47 = arith.index_cast %c6_i32 : i32 to index
    %c0_30 = arith.constant 0 : index
    %c0_31 = arith.constant 0 : index
    %48 = vector.load %arg11[%47, %c0_30, %c0_31] : memref<30x8x128xf32, #tpu.memory_space<vmem>>, vector<1x8x64xf32>
    %49 = vector.shape_cast %48 : vector<1x8x64xf32> to vector<8x64xf32>
    %cst_32 = arith.constant dense<0.000000e+00> : vector<8x64xf32>
    %50 = tpu.matmul %46, %9, %cst_32 {dimension_numbers = #tpu.dot_dimension_numbers<[1], [0], [0], [1], [0, 0, 1, 1], [], []>} : vector<8x64xf32>, vector<64x64xf32>, vector<8x64xf32> -> vector<8x64xf32>
    %51 = arith.addf %49, %50 : vector<8x64xf32>
    %52 = math.tanh %51 : vector<8x64xf32>
    %c7_i32 = arith.constant 7 : i32
    %53 = arith.index_cast %c7_i32 : i32 to index
    %c0_33 = arith.constant 0 : index
    %c0_34 = arith.constant 0 : index
    %54 = vector.load %arg11[%53, %c0_33, %c0_34] : memref<30x8x128xf32, #tpu.memory_space<vmem>>, vector<1x8x64xf32>
    %55 = vector.shape_cast %54 : vector<1x8x64xf32> to vector<8x64xf32>
    %cst_35 = arith.constant dense<0.000000e+00> : vector<8x64xf32>
    %56 = tpu.matmul %52, %9, %cst_35 {dimension_numbers = #tpu.dot_dimension_numbers<[1], [0], [0], [1], [0, 0, 1, 1], [], []>} : vector<8x64xf32>, vector<64x64xf32>, vector<8x64xf32> -> vector<8x64xf32>
    %57 = arith.addf %55, %56 : vector<8x64xf32>
    %58 = math.tanh %57 : vector<8x64xf32>
    %c8_i32 = arith.constant 8 : i32
    %59 = arith.index_cast %c8_i32 : i32 to index
    %c0_36 = arith.constant 0 : index
    %c0_37 = arith.constant 0 : index
    %60 = vector.load %arg11[%59, %c0_36, %c0_37] : memref<30x8x128xf32, #tpu.memory_space<vmem>>, vector<1x8x64xf32>
    %61 = vector.shape_cast %60 : vector<1x8x64xf32> to vector<8x64xf32>
    %cst_38 = arith.constant dense<0.000000e+00> : vector<8x64xf32>
    %62 = tpu.matmul %58, %9, %cst_38 {dimension_numbers = #tpu.dot_dimension_numbers<[1], [0], [0], [1], [0, 0, 1, 1], [], []>} : vector<8x64xf32>, vector<64x64xf32>, vector<8x64xf32> -> vector<8x64xf32>
    %63 = arith.addf %61, %62 : vector<8x64xf32>
    %64 = math.tanh %63 : vector<8x64xf32>
    %c9_i32 = arith.constant 9 : i32
    %65 = arith.index_cast %c9_i32 : i32 to index
    %c0_39 = arith.constant 0 : index
    %c0_40 = arith.constant 0 : index
    %66 = vector.load %arg11[%65, %c0_39, %c0_40] : memref<30x8x128xf32, #tpu.memory_space<vmem>>, vector<1x8x64xf32>
    %67 = vector.shape_cast %66 : vector<1x8x64xf32> to vector<8x64xf32>
    %cst_41 = arith.constant dense<0.000000e+00> : vector<8x64xf32>
    %68 = tpu.matmul %64, %9, %cst_41 {dimension_numbers = #tpu.dot_dimension_numbers<[1], [0], [0], [1], [0, 0, 1, 1], [], []>} : vector<8x64xf32>, vector<64x64xf32>, vector<8x64xf32> -> vector<8x64xf32>
    %69 = arith.addf %67, %68 : vector<8x64xf32>
    %70 = math.tanh %69 : vector<8x64xf32>
    %c10_i32 = arith.constant 10 : i32
    %71 = arith.index_cast %c10_i32 : i32 to index
    %c0_42 = arith.constant 0 : index
    %c0_43 = arith.constant 0 : index
    %72 = vector.load %arg11[%71, %c0_42, %c0_43] : memref<30x8x128xf32, #tpu.memory_space<vmem>>, vector<1x8x64xf32>
    %73 = vector.shape_cast %72 : vector<1x8x64xf32> to vector<8x64xf32>
    %cst_44 = arith.constant dense<0.000000e+00> : vector<8x64xf32>
    %74 = tpu.matmul %70, %9, %cst_44 {dimension_numbers = #tpu.dot_dimension_numbers<[1], [0], [0], [1], [0, 0, 1, 1], [], []>} : vector<8x64xf32>, vector<64x64xf32>, vector<8x64xf32> -> vector<8x64xf32>
    %75 = arith.addf %73, %74 : vector<8x64xf32>
    %76 = math.tanh %75 : vector<8x64xf32>
    %c11_i32 = arith.constant 11 : i32
    %77 = arith.index_cast %c11_i32 : i32 to index
    %c0_45 = arith.constant 0 : index
    %c0_46 = arith.constant 0 : index
    %78 = vector.load %arg11[%77, %c0_45, %c0_46] : memref<30x8x128xf32, #tpu.memory_space<vmem>>, vector<1x8x64xf32>
    %79 = vector.shape_cast %78 : vector<1x8x64xf32> to vector<8x64xf32>
    %cst_47 = arith.constant dense<0.000000e+00> : vector<8x64xf32>
    %80 = tpu.matmul %76, %9, %cst_47 {dimension_numbers = #tpu.dot_dimension_numbers<[1], [0], [0], [1], [0, 0, 1, 1], [], []>} : vector<8x64xf32>, vector<64x64xf32>, vector<8x64xf32> -> vector<8x64xf32>
    %81 = arith.addf %79, %80 : vector<8x64xf32>
    %82 = math.tanh %81 : vector<8x64xf32>
    %c12_i32 = arith.constant 12 : i32
    %83 = arith.index_cast %c12_i32 : i32 to index
    %c0_48 = arith.constant 0 : index
    %c0_49 = arith.constant 0 : index
    %84 = vector.load %arg11[%83, %c0_48, %c0_49] : memref<30x8x128xf32, #tpu.memory_space<vmem>>, vector<1x8x64xf32>
    %85 = vector.shape_cast %84 : vector<1x8x64xf32> to vector<8x64xf32>
    %cst_50 = arith.constant dense<0.000000e+00> : vector<8x64xf32>
    %86 = tpu.matmul %82, %9, %cst_50 {dimension_numbers = #tpu.dot_dimension_numbers<[1], [0], [0], [1], [0, 0, 1, 1], [], []>} : vector<8x64xf32>, vector<64x64xf32>, vector<8x64xf32> -> vector<8x64xf32>
    %87 = arith.addf %85, %86 : vector<8x64xf32>
    %88 = math.tanh %87 : vector<8x64xf32>
    %c13_i32 = arith.constant 13 : i32
    %89 = arith.index_cast %c13_i32 : i32 to index
    %c0_51 = arith.constant 0 : index
    %c0_52 = arith.constant 0 : index
    %90 = vector.load %arg11[%89, %c0_51, %c0_52] : memref<30x8x128xf32, #tpu.memory_space<vmem>>, vector<1x8x64xf32>
    %91 = vector.shape_cast %90 : vector<1x8x64xf32> to vector<8x64xf32>
    %cst_53 = arith.constant dense<0.000000e+00> : vector<8x64xf32>
    %92 = tpu.matmul %88, %9, %cst_53 {dimension_numbers = #tpu.dot_dimension_numbers<[1], [0], [0], [1], [0, 0, 1, 1], [], []>} : vector<8x64xf32>, vector<64x64xf32>, vector<8x64xf32> -> vector<8x64xf32>
    %93 = arith.addf %91, %92 : vector<8x64xf32>
    %94 = math.tanh %93 : vector<8x64xf32>
    %c14_i32 = arith.constant 14 : i32
    %95 = arith.index_cast %c14_i32 : i32 to index
    %c0_54 = arith.constant 0 : index
    %c0_55 = arith.constant 0 : index
    %96 = vector.load %arg11[%95, %c0_54, %c0_55] : memref<30x8x128xf32, #tpu.memory_space<vmem>>, vector<1x8x64xf32>
    %97 = vector.shape_cast %96 : vector<1x8x64xf32> to vector<8x64xf32>
    %cst_56 = arith.constant dense<0.000000e+00> : vector<8x64xf32>
    %98 = tpu.matmul %94, %9, %cst_56 {dimension_numbers = #tpu.dot_dimension_numbers<[1], [0], [0], [1], [0, 0, 1, 1], [], []>} : vector<8x64xf32>, vector<64x64xf32>, vector<8x64xf32> -> vector<8x64xf32>
    %99 = arith.addf %97, %98 : vector<8x64xf32>
    %100 = math.tanh %99 : vector<8x64xf32>
    %c15_i32 = arith.constant 15 : i32
    %101 = arith.index_cast %c15_i32 : i32 to index
    %c0_57 = arith.constant 0 : index
    %c0_58 = arith.constant 0 : index
    %102 = vector.load %arg11[%101, %c0_57, %c0_58] : memref<30x8x128xf32, #tpu.memory_space<vmem>>, vector<1x8x64xf32>
    %103 = vector.shape_cast %102 : vector<1x8x64xf32> to vector<8x64xf32>
    %cst_59 = arith.constant dense<0.000000e+00> : vector<8x64xf32>
    %104 = tpu.matmul %100, %9, %cst_59 {dimension_numbers = #tpu.dot_dimension_numbers<[1], [0], [0], [1], [0, 0, 1, 1], [], []>} : vector<8x64xf32>, vector<64x64xf32>, vector<8x64xf32> -> vector<8x64xf32>
    %105 = arith.addf %103, %104 : vector<8x64xf32>
    %106 = math.tanh %105 : vector<8x64xf32>
    %c16_i32 = arith.constant 16 : i32
    %107 = arith.index_cast %c16_i32 : i32 to index
    %c0_60 = arith.constant 0 : index
    %c0_61 = arith.constant 0 : index
    %108 = vector.load %arg11[%107, %c0_60, %c0_61] : memref<30x8x128xf32, #tpu.memory_space<vmem>>, vector<1x8x64xf32>
    %109 = vector.shape_cast %108 : vector<1x8x64xf32> to vector<8x64xf32>
    %cst_62 = arith.constant dense<0.000000e+00> : vector<8x64xf32>
    %110 = tpu.matmul %106, %9, %cst_62 {dimension_numbers = #tpu.dot_dimension_numbers<[1], [0], [0], [1], [0, 0, 1, 1], [], []>} : vector<8x64xf32>, vector<64x64xf32>, vector<8x64xf32> -> vector<8x64xf32>
    %111 = arith.addf %109, %110 : vector<8x64xf32>
    %112 = math.tanh %111 : vector<8x64xf32>
    %c17_i32 = arith.constant 17 : i32
    %113 = arith.index_cast %c17_i32 : i32 to index
    %c0_63 = arith.constant 0 : index
    %c0_64 = arith.constant 0 : index
    %114 = vector.load %arg11[%113, %c0_63, %c0_64] : memref<30x8x128xf32, #tpu.memory_space<vmem>>, vector<1x8x64xf32>
    %115 = vector.shape_cast %114 : vector<1x8x64xf32> to vector<8x64xf32>
    %cst_65 = arith.constant dense<0.000000e+00> : vector<8x64xf32>
    %116 = tpu.matmul %112, %9, %cst_65 {dimension_numbers = #tpu.dot_dimension_numbers<[1], [0], [0], [1], [0, 0, 1, 1], [], []>} : vector<8x64xf32>, vector<64x64xf32>, vector<8x64xf32> -> vector<8x64xf32>
    %117 = arith.addf %115, %116 : vector<8x64xf32>
    %118 = math.tanh %117 : vector<8x64xf32>
    %c18_i32 = arith.constant 18 : i32
    %119 = arith.index_cast %c18_i32 : i32 to index
    %c0_66 = arith.constant 0 : index
    %c0_67 = arith.constant 0 : index
    %120 = vector.load %arg11[%119, %c0_66, %c0_67] : memref<30x8x128xf32, #tpu.memory_space<vmem>>, vector<1x8x64xf32>
    %121 = vector.shape_cast %120 : vector<1x8x64xf32> to vector<8x64xf32>
    %cst_68 = arith.constant dense<0.000000e+00> : vector<8x64xf32>
    %122 = tpu.matmul %118, %9, %cst_68 {dimension_numbers = #tpu.dot_dimension_numbers<[1], [0], [0], [1], [0, 0, 1, 1], [], []>} : vector<8x64xf32>, vector<64x64xf32>, vector<8x64xf32> -> vector<8x64xf32>
    %123 = arith.addf %121, %122 : vector<8x64xf32>
    %124 = math.tanh %123 : vector<8x64xf32>
    %c19_i32 = arith.constant 19 : i32
    %125 = arith.index_cast %c19_i32 : i32 to index
    %c0_69 = arith.constant 0 : index
    %c0_70 = arith.constant 0 : index
    %126 = vector.load %arg11[%125, %c0_69, %c0_70] : memref<30x8x128xf32, #tpu.memory_space<vmem>>, vector<1x8x64xf32>
    %127 = vector.shape_cast %126 : vector<1x8x64xf32> to vector<8x64xf32>
    %cst_71 = arith.constant dense<0.000000e+00> : vector<8x64xf32>
    %128 = tpu.matmul %124, %9, %cst_71 {dimension_numbers = #tpu.dot_dimension_numbers<[1], [0], [0], [1], [0, 0, 1, 1], [], []>} : vector<8x64xf32>, vector<64x64xf32>, vector<8x64xf32> -> vector<8x64xf32>
    %129 = arith.addf %127, %128 : vector<8x64xf32>
    %130 = math.tanh %129 : vector<8x64xf32>
    %c20_i32 = arith.constant 20 : i32
    %131 = arith.index_cast %c20_i32 : i32 to index
    %c0_72 = arith.constant 0 : index
    %c0_73 = arith.constant 0 : index
    %132 = vector.load %arg11[%131, %c0_72, %c0_73] : memref<30x8x128xf32, #tpu.memory_space<vmem>>, vector<1x8x64xf32>
    %133 = vector.shape_cast %132 : vector<1x8x64xf32> to vector<8x64xf32>
    %cst_74 = arith.constant dense<0.000000e+00> : vector<8x64xf32>
    %134 = tpu.matmul %130, %9, %cst_74 {dimension_numbers = #tpu.dot_dimension_numbers<[1], [0], [0], [1], [0, 0, 1, 1], [], []>} : vector<8x64xf32>, vector<64x64xf32>, vector<8x64xf32> -> vector<8x64xf32>
    %135 = arith.addf %133, %134 : vector<8x64xf32>
    %136 = math.tanh %135 : vector<8x64xf32>
    %c21_i32 = arith.constant 21 : i32
    %137 = arith.index_cast %c21_i32 : i32 to index
    %c0_75 = arith.constant 0 : index
    %c0_76 = arith.constant 0 : index
    %138 = vector.load %arg11[%137, %c0_75, %c0_76] : memref<30x8x128xf32, #tpu.memory_space<vmem>>, vector<1x8x64xf32>
    %139 = vector.shape_cast %138 : vector<1x8x64xf32> to vector<8x64xf32>
    %cst_77 = arith.constant dense<0.000000e+00> : vector<8x64xf32>
    %140 = tpu.matmul %136, %9, %cst_77 {dimension_numbers = #tpu.dot_dimension_numbers<[1], [0], [0], [1], [0, 0, 1, 1], [], []>} : vector<8x64xf32>, vector<64x64xf32>, vector<8x64xf32> -> vector<8x64xf32>
    %141 = arith.addf %139, %140 : vector<8x64xf32>
    %142 = math.tanh %141 : vector<8x64xf32>
    %c22_i32 = arith.constant 22 : i32
    %143 = arith.index_cast %c22_i32 : i32 to index
    %c0_78 = arith.constant 0 : index
    %c0_79 = arith.constant 0 : index
    %144 = vector.load %arg11[%143, %c0_78, %c0_79] : memref<30x8x128xf32, #tpu.memory_space<vmem>>, vector<1x8x64xf32>
    %145 = vector.shape_cast %144 : vector<1x8x64xf32> to vector<8x64xf32>
    %cst_80 = arith.constant dense<0.000000e+00> : vector<8x64xf32>
    %146 = tpu.matmul %142, %9, %cst_80 {dimension_numbers = #tpu.dot_dimension_numbers<[1], [0], [0], [1], [0, 0, 1, 1], [], []>} : vector<8x64xf32>, vector<64x64xf32>, vector<8x64xf32> -> vector<8x64xf32>
    %147 = arith.addf %145, %146 : vector<8x64xf32>
    %148 = math.tanh %147 : vector<8x64xf32>
    %c23_i32 = arith.constant 23 : i32
    %149 = arith.index_cast %c23_i32 : i32 to index
    %c0_81 = arith.constant 0 : index
    %c0_82 = arith.constant 0 : index
    %150 = vector.load %arg11[%149, %c0_81, %c0_82] : memref<30x8x128xf32, #tpu.memory_space<vmem>>, vector<1x8x64xf32>
    %151 = vector.shape_cast %150 : vector<1x8x64xf32> to vector<8x64xf32>
    %cst_83 = arith.constant dense<0.000000e+00> : vector<8x64xf32>
    %152 = tpu.matmul %148, %9, %cst_83 {dimension_numbers = #tpu.dot_dimension_numbers<[1], [0], [0], [1], [0, 0, 1, 1], [], []>} : vector<8x64xf32>, vector<64x64xf32>, vector<8x64xf32> -> vector<8x64xf32>
    %153 = arith.addf %151, %152 : vector<8x64xf32>
    %154 = math.tanh %153 : vector<8x64xf32>
    %c24_i32 = arith.constant 24 : i32
    %155 = arith.index_cast %c24_i32 : i32 to index
    %c0_84 = arith.constant 0 : index
    %c0_85 = arith.constant 0 : index
    %156 = vector.load %arg11[%155, %c0_84, %c0_85] : memref<30x8x128xf32, #tpu.memory_space<vmem>>, vector<1x8x64xf32>
    %157 = vector.shape_cast %156 : vector<1x8x64xf32> to vector<8x64xf32>
    %cst_86 = arith.constant dense<0.000000e+00> : vector<8x64xf32>
    %158 = tpu.matmul %154, %9, %cst_86 {dimension_numbers = #tpu.dot_dimension_numbers<[1], [0], [0], [1], [0, 0, 1, 1], [], []>} : vector<8x64xf32>, vector<64x64xf32>, vector<8x64xf32> -> vector<8x64xf32>
    %159 = arith.addf %157, %158 : vector<8x64xf32>
    %160 = math.tanh %159 : vector<8x64xf32>
    %c25_i32 = arith.constant 25 : i32
    %161 = arith.index_cast %c25_i32 : i32 to index
    %c0_87 = arith.constant 0 : index
    %c0_88 = arith.constant 0 : index
    %162 = vector.load %arg11[%161, %c0_87, %c0_88] : memref<30x8x128xf32, #tpu.memory_space<vmem>>, vector<1x8x64xf32>
    %163 = vector.shape_cast %162 : vector<1x8x64xf32> to vector<8x64xf32>
    %cst_89 = arith.constant dense<0.000000e+00> : vector<8x64xf32>
    %164 = tpu.matmul %160, %9, %cst_89 {dimension_numbers = #tpu.dot_dimension_numbers<[1], [0], [0], [1], [0, 0, 1, 1], [], []>} : vector<8x64xf32>, vector<64x64xf32>, vector<8x64xf32> -> vector<8x64xf32>
    %165 = arith.addf %163, %164 : vector<8x64xf32>
    %166 = math.tanh %165 : vector<8x64xf32>
    %c26_i32 = arith.constant 26 : i32
    %167 = arith.index_cast %c26_i32 : i32 to index
    %c0_90 = arith.constant 0 : index
    %c0_91 = arith.constant 0 : index
    %168 = vector.load %arg11[%167, %c0_90, %c0_91] : memref<30x8x128xf32, #tpu.memory_space<vmem>>, vector<1x8x64xf32>
    %169 = vector.shape_cast %168 : vector<1x8x64xf32> to vector<8x64xf32>
    %cst_92 = arith.constant dense<0.000000e+00> : vector<8x64xf32>
    %170 = tpu.matmul %166, %9, %cst_92 {dimension_numbers = #tpu.dot_dimension_numbers<[1], [0], [0], [1], [0, 0, 1, 1], [], []>} : vector<8x64xf32>, vector<64x64xf32>, vector<8x64xf32> -> vector<8x64xf32>
    %171 = arith.addf %169, %170 : vector<8x64xf32>
    %172 = math.tanh %171 : vector<8x64xf32>
    %c27_i32 = arith.constant 27 : i32
    %173 = arith.index_cast %c27_i32 : i32 to index
    %c0_93 = arith.constant 0 : index
    %c0_94 = arith.constant 0 : index
    %174 = vector.load %arg11[%173, %c0_93, %c0_94] : memref<30x8x128xf32, #tpu.memory_space<vmem>>, vector<1x8x64xf32>
    %175 = vector.shape_cast %174 : vector<1x8x64xf32> to vector<8x64xf32>
    %cst_95 = arith.constant dense<0.000000e+00> : vector<8x64xf32>
    %176 = tpu.matmul %172, %9, %cst_95 {dimension_numbers = #tpu.dot_dimension_numbers<[1], [0], [0], [1], [0, 0, 1, 1], [], []>} : vector<8x64xf32>, vector<64x64xf32>, vector<8x64xf32> -> vector<8x64xf32>
    %177 = arith.addf %175, %176 : vector<8x64xf32>
    %178 = math.tanh %177 : vector<8x64xf32>
    %c28_i32 = arith.constant 28 : i32
    %179 = arith.index_cast %c28_i32 : i32 to index
    %c0_96 = arith.constant 0 : index
    %c0_97 = arith.constant 0 : index
    %180 = vector.load %arg11[%179, %c0_96, %c0_97] : memref<30x8x128xf32, #tpu.memory_space<vmem>>, vector<1x8x64xf32>
    %181 = vector.shape_cast %180 : vector<1x8x64xf32> to vector<8x64xf32>
    %cst_98 = arith.constant dense<0.000000e+00> : vector<8x64xf32>
    %182 = tpu.matmul %178, %9, %cst_98 {dimension_numbers = #tpu.dot_dimension_numbers<[1], [0], [0], [1], [0, 0, 1, 1], [], []>} : vector<8x64xf32>, vector<64x64xf32>, vector<8x64xf32> -> vector<8x64xf32>
    %183 = arith.addf %181, %182 : vector<8x64xf32>
    %184 = math.tanh %183 : vector<8x64xf32>
    %c29_i32 = arith.constant 29 : i32
    %185 = arith.index_cast %c29_i32 : i32 to index
    %c0_99 = arith.constant 0 : index
    %c0_100 = arith.constant 0 : index
    %186 = vector.load %arg11[%185, %c0_99, %c0_100] : memref<30x8x128xf32, #tpu.memory_space<vmem>>, vector<1x8x64xf32>
    %187 = vector.shape_cast %186 : vector<1x8x64xf32> to vector<8x64xf32>
    %cst_101 = arith.constant dense<0.000000e+00> : vector<8x64xf32>
    %188 = tpu.matmul %184, %9, %cst_101 {dimension_numbers = #tpu.dot_dimension_numbers<[1], [0], [0], [1], [0, 0, 1, 1], [], []>} : vector<8x64xf32>, vector<64x64xf32>, vector<8x64xf32> -> vector<8x64xf32>
    %189 = arith.addf %187, %188 : vector<8x64xf32>
    %190 = math.tanh %189 : vector<8x64xf32>
    %c30_i32 = arith.constant 30 : i32
    %c29 = arith.constant 29 : index
    %c0_102 = arith.constant 0 : index
    %c64 = arith.constant 64 : index
    %191 = vector.load %arg11[%c29, %c0_102, %c64] : memref<30x8x128xf32, #tpu.memory_space<vmem>>, vector<1x8x64xf32>
    %192 = vector.shape_cast %191 : vector<1x8x64xf32> to vector<8x64xf32>
    %193 = math.tanh %192 : vector<8x64xf32>
    %c0_103 = arith.constant 0 : index
    %c0_104 = arith.constant 0 : index
    %194 = vector.load %arg5[%c0_103, %c0_104] : memref<64x32xf32, #tpu.memory_space<vmem>>, vector<64x32xf32>
    %cst_105 = arith.constant dense<0.000000e+00> : vector<8x32xf32>
    %195 = tpu.matmul %190, %194, %cst_105 {dimension_numbers = #tpu.dot_dimension_numbers<[1], [0], [0], [1], [0, 0, 1, 1], [], []>} : vector<8x64xf32>, vector<64x32xf32>, vector<8x32xf32> -> vector<8x32xf32>
    %c0_106 = arith.constant 0 : index
    %c0_107 = arith.constant 0 : index
    %196 = vector.load %arg6[%c0_106, %c0_107] : memref<64x32xf32, #tpu.memory_space<vmem>>, vector<64x32xf32>
    %cst_108 = arith.constant dense<0.000000e+00> : vector<8x32xf32>
    %197 = tpu.matmul %193, %196, %cst_108 {dimension_numbers = #tpu.dot_dimension_numbers<[1], [0], [0], [1], [0, 0, 1, 1], [], []>} : vector<8x64xf32>, vector<64x32xf32>, vector<8x32xf32> -> vector<8x32xf32>
    %198 = arith.addf %195, %197 : vector<8x32xf32>
    %c0_109 = arith.constant 0 : index
    %c0_110 = arith.constant 0 : index
    %199 = vector.load %arg7[%c0_109, %c0_110] : memref<1x32xf32, #tpu.memory_space<vmem>>, vector<1x32xf32>
    %200 = vector.broadcast %199 : vector<1x32xf32> to vector<8x32xf32>
    %201 = arith.addf %198, %200 : vector<8x32xf32>
    %cst_111 = arith.constant 0.000000e+00 : f32
    %202 = vector.broadcast %cst_111 : f32 to vector<8x32xf32>
    %203 = arith.maximumf %201, %202 : vector<8x32xf32>
    %c0_112 = arith.constant 0 : index
    %c0_113 = arith.constant 0 : index
    %204 = vector.load %arg8[%c0_112, %c0_113] : memref<32x1xf32, #tpu.memory_space<vmem>>, vector<32x1xf32>
    %cst_114 = arith.constant dense<0.000000e+00> : vector<8x1xf32>
    %205 = tpu.matmul %203, %204, %cst_114 {dimension_numbers = #tpu.dot_dimension_numbers<[1], [0], [0], [1], [0, 0, 1, 1], [], []>} : vector<8x32xf32>, vector<32x1xf32>, vector<8x1xf32> -> vector<8x1xf32>
    %c0_115 = arith.constant 0 : index
    %c0_116 = arith.constant 0 : index
    %206 = vector.load %arg9[%c0_115, %c0_116] : memref<1x1xf32, #tpu.memory_space<vmem>>, vector<1x1xf32>
    %207 = vector.broadcast %206 : vector<1x1xf32> to vector<8x1xf32>
    %208 = arith.addf %205, %207 : vector<8x1xf32>
    %209 = arith.negf %208 : vector<8x1xf32>
    %210 = math.exp %209 : vector<8x1xf32>
    %cst_117 = arith.constant 1.000000e+00 : f32
    %211 = vector.broadcast %cst_117 : f32 to vector<8x1xf32>
    %212 = arith.addf %211, %210 : vector<8x1xf32>
    %213 = arith.divf %211, %212 : vector<8x1xf32>
    %c0_118 = arith.constant 0 : index
    %c0_119 = arith.constant 0 : index
    %214 = vector.load %arg10[%c0_118, %c0_119] : memref<8x1xf32, #tpu.memory_space<vmem>>, vector<8x1xf32>
    tpu.vector_store %arg10[%c0_118, %c0_119], %213 {strides = array<i32>} : memref<8x1xf32, #tpu.memory_space<vmem>>, vector<8x1xf32>,
    return
  }
  func.func @transform_0(%arg0: i32) -> (i32, i32, i32) {
    %c0_i32 = arith.constant 0 : i32
    %c0_i32_0 = arith.constant 0 : i32
    %c0_i32_1 = arith.constant 0 : i32
    return %c0_i32, %arg0, %c0_i32_0 : i32, i32, i32
  }
  func.func @transform_1(%arg0: i32) -> (i32, i32) {
    %c0_i32 = arith.constant 0 : i32
    %c0_i32_0 = arith.constant 0 : i32
    %c0_i32_1 = arith.constant 0 : i32
    return %c0_i32, %c0_i32_0 : i32, i32
  }
  func.func @transform_2(%arg0: i32) -> (i32, i32) {
    %c0_i32 = arith.constant 0 : i32
    %c0_i32_0 = arith.constant 0 : i32
    %c0_i32_1 = arith.constant 0 : i32
    return %c0_i32, %c0_i32_0 : i32, i32
  }
  func.func @transform_3(%arg0: i32) -> (i32, i32) {
    %c0_i32 = arith.constant 0 : i32
    %c0_i32_0 = arith.constant 0 : i32
    %c0_i32_1 = arith.constant 0 : i32
    return %c0_i32, %c0_i32_0 : i32, i32
  }
  func.func @transform_4(%arg0: i32) -> (i32, i32) {
    %c0_i32 = arith.constant 0 : i32
    %c0_i32_0 = arith.constant 0 : i32
    %c0_i32_1 = arith.constant 0 : i32
    return %c0_i32, %c0_i32_0 : i32, i32
  }
  func.func @transform_5(%arg0: i32) -> (i32, i32) {
    %c0_i32 = arith.constant 0 : i32
    %c0_i32_0 = arith.constant 0 : i32
    %c0_i32_1 = arith.constant 0 : i32
    return %c0_i32, %c0_i32_0 : i32, i32
  }
  func.func @transform_6(%arg0: i32) -> (i32, i32) {
    %c0_i32 = arith.constant 0 : i32
    %c0_i32_0 = arith.constant 0 : i32
    %c0_i32_1 = arith.constant 0 : i32
    return %c0_i32, %c0_i32_0 : i32, i32
  }
  func.func @transform_7(%arg0: i32) -> (i32, i32) {
    %c0_i32 = arith.constant 0 : i32
    %c0_i32_0 = arith.constant 0 : i32
    %c0_i32_1 = arith.constant 0 : i32
    return %c0_i32, %c0_i32_0 : i32, i32
  }
  func.func @transform_8(%arg0: i32) -> (i32, i32) {
    %c0_i32 = arith.constant 0 : i32
    %c0_i32_0 = arith.constant 0 : i32
    %c0_i32_1 = arith.constant 0 : i32
    return %c0_i32, %c0_i32_0 : i32, i32
  }
  func.func @transform_9(%arg0: i32) -> (i32, i32) {
    %c0_i32 = arith.constant 0 : i32
    %c0_i32_0 = arith.constant 0 : i32
    return %arg0, %c0_i32 : i32, i32
  }
}

</mosaic_0001>

<bundles_post_ra>
// kernel: tpu_custom_call.1
= control target key start
LH: loop header
LB: loop body
LE: loop exit
PB: predicated region body
PF: predicated region fallthrough
CT: control target
= control target key end

     0   :  { %s5326_s0 = inlined_call_operand.hbm [shape: f32[30,8,100], index: 0, kind: input, shape index: {}]   ;;  %s5327_s1 = inlined_call_operand.vmem [shape: f32[100,128], index: 1, kind: input, shape index: {}]   ;;  %s5328_s2 = inlined_call_operand.vmem [shape: f32[1,128], index: 2, kind: input, shape index: {}]   ;;  %s5329_s3 = inlined_call_operand.vmem [shape: f32[64,64], index: 3, kind: input, shape index: {}]   ;;  %s5330_s4 = inlined_call_operand.vmem [shape: f32[64,32], index: 4, kind: input, shape index: {}]   ;;  %s5331_s5 = inlined_call_operand.vmem [shape: f32[64,32], index: 5, kind: input, shape index: {}]   ;;  %s5332_s6 = inlined_call_operand.vmem [shape: f32[1,32], index: 6, kind: input, shape index: {}]   ;;  %s5333_s7 = inlined_call_operand.vmem [shape: f32[32,1], index: 7, kind: input, shape index: {}]   ;;  %s5334_s8 = inlined_call_operand.<no memory space> [shape: f32[1,1], index: 8, kind: input, shape index: {}]   ;;  %s5335_s9 = inlined_call_operand.vmem [shape: f32[8,1], index: 9, kind: output, shape index: {}]  }
   0x1   :  { %v14_v0 = vstv %s5334_s8 }
   0x2   :  { %15 = vst [vmem:[#allocation3] sm:$0x1] %v14_v0 }
   0x3   :  { %16 = vsyncpa [#allocation5], 0  ;;  %s4633_s11 = smov [#allocation4]   ;;  %s4609_s15 = scalar_lea.hbm %s5326_s0, 3840 }
   0x4   :  { %s22_s12 = sshll.u32 %s4633_s11, 4  ;;  %p4610_p0 = scmp.ne.s32.totalorder %s5326_s0, %s4609_s15  ;;  %s23_s12 = int_to_ptr.vmem [resolvable:$true] %s22_s12 }
   0x5   :  { %p4613_p1 = scmp.lt.u32.totalorder %s4609_s15, %s5326_s0 }
   0x7   :  { %p4615_p2 = pnand %p4613_p1, %p4610_p0 }
   0x9   :  { %4618 = shalt.err (!%p4615_p2)
}
   0xa   :  { %s4619_s8 = scalar_lea.vmem %s23_s12, 3840  ;;  %p4624_p4 = scmp.lt.s32.totalorder %s23_s12, %s23_s12 }
   0xb   :  { %p4620_p3 = scmp.ne.s32.totalorder %s23_s12, %s4619_s8  ;;  %p4625_p5 = scmp.lt.s32.totalorder %s4619_s8, %s4619_s8 }
   0xd   :  { %p4626_p6 = por %p4625_p5, %p4624_p4 }
   0xf   :  { %p4627_p7 = pnand %p4626_p6, %p4620_p3 }
  0x11   :  { %4630 = shalt.err (!%p4627_p7)
}
  0x12   :  { %s4634_s20 = smov 128   ;;  %s4635_s21 = smov 8  }
  0x13   :  { %28 = dma.hbm_to_vmem [thread:$0]  %s5326_s0, 3840, %s23_s12, [#allocation5], %s4634_s20, %s4634_s20, %s4635_s21  }
  0x14   :  { %4631 = dma.done.wait [#allocation5], 3840  }
  0x15   :  { %4632 = vsyncadd [#allocation5], 4294963456  ;;  %v4636_v1 = vmov 0.0|0.0   ;;  %vm4637_vm0 = vmmov 0   ;;  %v4638_v2 = vmov 0.0   ;;  %v78_v3 = vld [vmem:[%s5327_s1] sm:$0xff] }
  0x16   :  { %4145 = vmatprep.subr.bf16.mxu1 %v4636_v1  ;;  %3518 = vmatprep.mubr.msk.f32.mxu1 %vm4637_vm0, %v4638_v2  ;;  %v79_v4 = vld [vmem:[%s5327_s1 + $0x8] sm:$0xff]  ;;  %v80_v5 = vld [vmem:[%s5327_s1 + $0x10] sm:$0xff]  ;;  %v81_v7 = vld [vmem:[%s5327_s1 + $0x18] sm:$0xff]  ;;  %vm98_vm1 = vcmask 818176   ;;  %vm189_vm2 = vcmask 1043456   ;;  %vm447_vm3 = vcmask 523264  }
  0x17   :  { %v4121_v6 = vpack.c.bf16 %v79_v4, %v78_v3  ;;  %v4125_v8 = vpack.c.bf16 %v81_v7, %v80_v5  ;;  %v82_v9 = vld [vmem:[%s5327_s1 + $0x20] sm:$0xff]  ;;  %v83_v10 = vld [vmem:[%s5327_s1 + $0x28] sm:$0xff]  ;;  %v440_v14 = vld [vmem:[%s5329_s3 + $0x10] sm:$0xff]  ;;  %s4639_s20 = smov 64   ;;  %vm2941_vm4 = vcmask 261120   ;;  %vm3021_vm5 = vcmask 7168  }
  0x18   :  { %v438_v11 = vld [vmem:[%s5329_s3] sm:$0xff]  ;;  %v439_v12 = vld [vmem:[%s5329_s3 + $0x8] sm:$0xff]  ;;  %v441_v15 = vld [vmem:[%s5329_s3 + $0x18] sm:$0xff]  ;;  %v4129_v16 = vpack.c.bf16 %v83_v10, %v82_v9 }
  0x19   :  { %4122 = vmatprep.subr.bf16.mxu0 %v4121_v6  ;;  %v4732_v13 = vpack.c.bf16 %v439_v12, %v438_v11  ;;  %v84_v17 = vld [vmem:[%s5327_s1 + $0x30] sm:$0xff]  ;;  %v85_v18 = vld [vmem:[%s5327_s1 + $0x38] sm:$0xff]  ;;  %v4747_v19 = vpack.c.bf16 %v441_v15, %v440_v14  ;;  %v48_v20 = vld [vmem:[#allocation4] sm:$0xff] }
  0x1a   :  { %4124 = vmatpush3.bf16.msra.mxu0 %v4121_v6  ;;  %v442_v21 = vld [vmem:[%s5329_s3 + $0x20] sm:$0xff]  ;;  %v443_v22 = vld [vmem:[%s5329_s3 + $0x28] sm:$0xff]  ;;  %3457 = vmatprep.mubr.msk.f32.mxu0 %vm98_vm1, %v48_v20  ;;  %v4133_v23 = vpack.c.bf16 %v85_v18, %v84_v17  ;;  %v444_v27 = vld [vmem:[%s5329_s3 + $0x30] sm:$0xff] }
  0x1b   :  { %4126 = vmatprep.subr.bf16.mxu0 %v4125_v8  ;;  %4147 = vmatpush3.bf16.msra.mxu1 %v4732_v13  ;;  %v86_v24 = vld [vmem:[%s5327_s1 + $0x40] sm:$0xff]  ;;  %v87_v25 = vld [vmem:[%s5327_s1 + $0x48] sm:$0xff]  ;;  %v4764_v26 = vpack.c.bf16 %v443_v22, %v442_v21  ;;  %v445_v28 = vld [vmem:[%s5329_s3 + $0x38] sm:$0xff] }
  0x1c   :  { %4148 = vmatprep.subr.bf16.mxu1 %v4636_v1  ;;  %v4137_v29 = vpack.c.bf16 %v87_v25, %v86_v24  ;;  %v88_v30 = vld [vmem:[%s5327_s1 + $0x50] sm:$0xff]  ;;  %v89_v31 = vld [vmem:[%s5327_s1 + $0x58] sm:$0xff]  ;;  %v4780_v32 = vpack.c.bf16 %v445_v28, %v444_v27  ;;  %v90_v34 = vld [vmem:[%s5327_s1 + $0x60] sm:$0xf] }
  0x1d   :  { %v4141_v33 = vpack.c.bf16 %v89_v31, %v88_v30  ;;  %v49_v35 = vld [vmem:[#allocation4 + $0x8] sm:$0xff]  ;;  %v4812_v38 = vld [vmem:[%s5328_s2] ss:$0 sm:$0xff]  ;;  %v50_v44 = vld [vmem:[#allocation4 + $0x10] sm:$0xff] }
  0x1e   :  { %4128 = vmatpush3.bf16.msra.mxu0 %v4125_v8  ;;  %v51_v45 = vld [vmem:[#allocation4 + $0x18] sm:$0xff]  ;;  %v52_v58 = vld [vmem:[#allocation4 + $0x20] sm:$0xff]  ;;  %v53_v59 = vld [vmem:[#allocation4 + $0x28] sm:$0xff] }
  0x1f   :  { %4130 = vmatprep.subr.bf16.mxu0 %v4129_v16  ;;  %4150 = vmatpush3.bf16.msra.mxu1 %v4747_v19  ;;  %v54_v60 = vld [vmem:[#allocation4 + $0x30] sm:$0xff]  ;;  %v55_v61 = vld [vmem:[#allocation4 + $0x38] sm:$0xff]  ;;  %v56_v62 = vld [vmem:[#allocation4 + $0x40] sm:$0xff] }
  0x20   :  { %4151 = vmatprep.subr.bf16.mxu1 %v4636_v1  ;;  %v57_v63 = vld [vmem:[#allocation4 + $0x48] sm:$0xff]  ;;  %v58_v0 = vld [vmem:[#allocation4 + $0x50] sm:$0xff]  ;;  %v59_v3 = vld [vmem:[#allocation4 + $0x58] sm:$0xff] }
  0x21   :  { %v60_v4 = vld [vmem:[#allocation4 + $0x60] sm:$0xff]  ;;  %v61_v5 = vld [vmem:[#allocation4 + $0x68] sm:$0xff]  ;;  %v62_v6 = vld [vmem:[#allocation4 + $0x70] sm:$0xff] }
  0x22   :  { %4132 = vmatpush3.bf16.msra.mxu0 %v4129_v16  ;;  %v63_v7 = vld [vmem:[#allocation4 + $0x78] sm:$0xff]  ;;  %v64_v8 = vld [vmem:[#allocation4 + $0x80] sm:$0xff]  ;;  %v65_v9 = vld [vmem:[#allocation4 + $0x88] sm:$0xff] }
  0x23   :  { %4134 = vmatprep.subr.bf16.mxu0 %v4133_v23  ;;  %4153 = vmatpush3.bf16.msra.mxu1 %v4764_v26  ;;  %v66_v10 = vld [vmem:[#allocation4 + $0x90] sm:$0xff]  ;;  %v67_v11 = vld [vmem:[#allocation4 + $0x98] sm:$0xff]  ;;  %v68_v12 = vld [vmem:[#allocation4 + $0xa0] sm:$0xff] }
  0x24   :  { %4154 = vmatprep.subr.bf16.mxu1 %v4636_v1  ;;  %v69_v14 = vld [vmem:[#allocation4 + $0xa8] sm:$0xff]  ;;  %v70_v15 = vld [vmem:[#allocation4 + $0xb0] sm:$0xff]  ;;  %v71_v16 = vld [vmem:[#allocation4 + $0xb8] sm:$0xff] }
  0x25   :  { %v72_v17 = vld [vmem:[#allocation4 + $0xc0] sm:$0xff]  ;;  %v73_v27 = vld [vmem:[#allocation4 + $0xc8] sm:$0xff]  ;;  %v74_v28 = vld [vmem:[#allocation4 + $0xd0] sm:$0xff] }
  0x26   :  { %4136 = vmatpush3.bf16.msra.mxu0 %v4133_v23  ;;  %v76_v30 = vld [vmem:[#allocation4 + $0xe0] sm:$0xff]  ;;  %v77_v31 = vld [vmem:[#allocation4 + $0xe8] sm:$0xff] }
  0x27   :  { %4138 = vmatprep.subr.bf16.mxu0 %v4137_v29  ;;  %4156 = vmatpush3.bf16.msra.mxu1 %v4780_v32 }
  0x28   :  { %4157 = vmatprep.subr.bf16.mxu1 %v4636_v1 }
  0x2a   :  { %4140 = vmatpush3.bf16.msra.mxu0 %v4137_v29  ;;  %3519 = vmatmul.mubr.f32.vlgmr.msra.gmra.mrb[0].mxu1 %v4638_v2  ;;  %v75_v29 = vld [vmem:[#allocation4 + $0xd8] sm:$0xff] }
  0x2b   :  { %4142 = vmatprep.subr.bf16.mxu0 %v4141_v33  ;;  %4159 = vmatpush3.bf16.msra.mxu1 %v4732_v13 }
  0x2c   :  { %3537 = vmatprep.mubr.msk.f32.mxu1 %vm4637_vm0, %v4638_v2  ;;  %4160 = vmatprep.subr.bf16.mxu1 %v4636_v1 }
  0x2e   :  { %4144 = vmatpush3.bf16.msra.mxu0 %v4141_v33 }
  0x2f   :  { %3455 = vmatprep.subr.msk.mxu0 %vm189_vm2, %v90_v34  ;;  %4162 = vmatpush3.bf16.msra.mxu1 %v4747_v19 }
  0x30   :  { %4163 = vmatprep.subr.bf16.mxu1 %v4636_v1 }
  0x32   :  { %3456 = vmatpush3.msk.msra.mxu0 %vm189_vm2, %v90_v34 }
  0x33   :  { %3458 = vmatmul.mubr.msk.f32.vlgmr.msra.gmra.mrb[0].mxu0 %vm98_vm1, %v49_v35  ;;  %4205 = vmatprep.subr.bf16.mxu0 %v4636_v1 }
  0x34   :  { %4165 = vmatpush3.bf16.msra.mxu1 %v4764_v26  ;;  %4207 = vmatpush3.bf16.msra.mxu0 %v4732_v13 }
  0x35   :  { %4166 = vmatprep.subr.bf16.mxu1 %v4636_v1  ;;  %4208 = vmatprep.subr.bf16.mxu0 %v4636_v1 }
  0x36   :  { %3460 = vmatprep.mubr.msk.f32.mxu0 %vm98_vm1, %v50_v44 }
  0x37   :  { %3461 = vmatmul.mubr.msk.f32.gmra.mrb[2].mxu0 %vm98_vm1, %v51_v45 }
  0x38   :  { %4168 = vmatpush3.bf16.msra.mxu1 %v4780_v32  ;;  %4210 = vmatpush3.bf16.msra.mxu0 %v4747_v19 }
  0x39   :  { %4169 = vmatprep.subr.bf16.mxu1 %v4636_v1  ;;  %4211 = vmatprep.subr.bf16.mxu0 %v4636_v1 }
  0x3a   :  { %3463 = vmatprep.mubr.msk.f32.mxu0 %vm98_vm1, %v52_v58 }
  0x3b   :  { %3464 = vmatmul.mubr.msk.f32.gmra.mrb[4].mxu0 %vm98_vm1, %v53_v59 }
  0x3c   :  { %4213 = vmatpush3.bf16.msra.mxu0 %v4764_v26  ;;  %3466 = vmatprep.mubr.msk.f32.mxu0 %vm98_vm1, %v54_v60 }
  0x3d   :  { %4214 = vmatprep.subr.bf16.mxu0 %v4636_v1 }
  0x3f   :  { %3467 = vmatmul.mubr.msk.f32.gmra.mrb[6].mxu0 %vm98_vm1, %v55_v61 }
  0x40   :  { %4216 = vmatpush3.bf16.msra.mxu0 %v4780_v32  ;;  %3469 = vmatprep.mubr.msk.f32.mxu0 %vm98_vm1, %v56_v62 }
  0x41   :  { %4229 = vmatprep.subr.bf16.mxu0 %v4636_v1 }
  0x43   :  { %3470 = vmatmul.mubr.msk.f32.gmra.mrb[8].mxu0 %vm98_vm1, %v57_v63 }
  0x44   :  { %3472 = vmatprep.mubr.msk.f32.mxu0 %vm98_vm1, %v58_v0 }
  0x47   :  { %3473 = vmatmul.mubr.msk.f32.gmra.mrb[10].mxu0 %vm98_vm1, %v59_v3 }
  0x48   :  { %3475 = vmatprep.mubr.msk.f32.mxu0 %vm98_vm1, %v60_v4 }
  0x4b   :  { %3476 = vmatmul.mubr.msk.f32.gmra.mrb[12].mxu0 %vm98_vm1, %v61_v5 }
  0x4c   :  { %3478 = vmatprep.mubr.msk.f32.mxu0 %vm98_vm1, %v62_v6 }
  0x4f   :  { %3479 = vmatmul.mubr.msk.f32.gmra.mrb[14].mxu0 %vm98_vm1, %v63_v7 }
  0x50   :  { %3481 = vmatprep.mubr.msk.f32.mxu0 %vm98_vm1, %v64_v8 }
  0x53   :  { %3482 = vmatmul.mubr.msk.f32.gmra.mrb[16].mxu0 %vm98_vm1, %v65_v9 }
  0x54   :  { %3484 = vmatprep.mubr.msk.f32.mxu0 %vm98_vm1, %v66_v10 }
  0x57   :  { %3485 = vmatmul.mubr.msk.f32.gmra.mrb[18].mxu0 %vm98_vm1, %v67_v11 }
  0x58   :  { %3487 = vmatprep.mubr.msk.f32.mxu0 %vm98_vm1, %v68_v12 }
  0x5b   :  { %3488 = vmatmul.mubr.msk.f32.gmra.mrb[20].mxu0 %vm98_vm1, %v69_v14 }
  0x5c   :  { %3490 = vmatprep.mubr.msk.f32.mxu0 %vm98_vm1, %v70_v15 }
  0x5f   :  { %3491 = vmatmul.mubr.msk.f32.gmra.mrb[22].mxu0 %vm98_vm1, %v71_v16 }
  0x60   :  { %3493 = vmatprep.mubr.msk.f32.mxu0 %vm98_vm1, %v72_v17 }
  0x63   :  { %3494 = vmatmul.mubr.msk.f32.gmra.mrb[24].mxu0 %vm98_vm1, %v73_v27 }
  0x64   :  { %3496 = vmatprep.mubr.msk.f32.mxu0 %vm98_vm1, %v74_v28 }
  0x67   :  { %3497 = vmatmul.mubr.msk.f32.gmra.mrb[26].mxu0 %vm98_vm1, %v75_v29 }
  0x68   :  { %3499 = vmatprep.mubr.msk.f32.mxu0 %vm98_vm1, %v76_v30 }
  0x6b   :  { %3500 = vmatmul.mubr.msk.f32.gmra.mrb[28].mxu0 %vm98_vm1, %v77_v31 }
  0x6c   :  { %3613 = vmatprep.mubr.msk.f32.mxu0 %vm4637_vm0, %v4638_v2 }
  0xfd   :  { %v517_v36 = vpop.f32.mrb[0].mxu1 }
  0xfe   :  { %v3520_v37 = vpop.f32.mrb[1].mxu1 }
 0x106   :  { %v3459_v39 = vpop.f32.mrb[0].mxu0 }
 0x107   :  { %v259_v40 = vpop.f32.mrb[1].mxu0  ;;  %v265_v46 = vadd.f32 %v3459_v39, %v4812_v38 }
 0x108   :  { %v260_v41 = vadd.f32 %v4812_v38, %v259_v40 }
 0x10a   :  { %v521_v42 = vadd.f32 %v517_v36, %v260_v41  ;;  %v3462_v51 = vpop.f32.mrb[2].mxu0 }
 0x10b   :  { %v269_v52 = vpop.f32.mrb[3].mxu0  ;;  %v275_v18 = vadd.f32 %v3462_v51, %v4812_v38 }
 0x10c   :  { %4542 = vtanh.f32 %v521_v42  ;;  %v270_v53 = vadd.f32 %v4812_v38, %v269_v52 }
 0x10e   :  { %v3465_v24 = vpop.f32.mrb[4].mxu0 }
 0x10f   :  { %v279_v25 = vpop.f32.mrb[5].mxu0  ;;  %v285_v3 = vadd.f32 %v3465_v24, %v4812_v38 }
 0x110   :  { %v280_v52 = vadd.f32 %v4812_v38, %v279_v25 }
 0x112   :  { %v4892_v33 = vpop.f32.mrb[6].mxu0 }
 0x113   :  { %v289_v34 = vpop.f32.mrb[7].mxu0  ;;  %v295_v14 = vadd.f32 %v4892_v33, %v4812_v38 }
 0x114   :  { %v290_v8 = vadd.f32 %v4812_v38, %v289_v34 }
 0x116   :  { %v4543_v43 = vpop.eup %4542  ;;  %v4894_v35 = vpop.f32.mrb[8].mxu0 }
 0x117   :  { %3538 = vmatmul.mubr.msk.f32.vlgmr.msra.gmra.mrb[2].mxu1 %vm447_vm3, %v4543_v43  ;;  %v4896_v36 = vpop.f32.mrb[9].mxu0  ;;  %v305_v25 = vadd.f32 %v4894_v35, %v4812_v38 }
 0x118   :  { %4171 = vmatpush3.bf16.msra.mxu1 %v4732_v13  ;;  %3556 = vmatprep.mubr.msk.f32.mxu1 %vm4637_vm0, %v4638_v2 }
 0x119   :  { %4172 = vmatprep.subr.bf16.mxu1 %v4636_v1 }
 0x11a   :  { %v4898_v37 = vpop.f32.mrb[10].mxu0 }
 0x11b   :  { %v4900_v39 = vpop.f32.mrb[11].mxu0 }
 0x11c   :  { %4174 = vmatpush3.bf16.msra.mxu1 %v4747_v19  ;;  %v310_v31 = vadd.f32 %v4812_v38, %v4900_v39  ;;  %v315_v39 = vadd.f32 %v4898_v37, %v4812_v38 }
 0x11d   :  { %4175 = vmatprep.subr.bf16.mxu1 %v4636_v1 }
 0x11e   :  { %v4902_v40 = vpop.f32.mrb[12].mxu0 }
 0x11f   :  { %v4904_v41 = vpop.f32.mrb[13].mxu0 }
 0x120   :  { %4177 = vmatpush3.bf16.msra.mxu1 %v4764_v26  ;;  %v320_v37 = vadd.f32 %v4812_v38, %v4904_v41  ;;  %v325_v41 = vadd.f32 %v4902_v40, %v4812_v38 }
 0x121   :  { %4178 = vmatprep.subr.bf16.mxu1 %v4636_v1 }
 0x122   :  { %v4906_v42 = vpop.f32.mrb[14].mxu0 }
 0x123   :  { %v4908_v43 = vpop.f32.mrb[15].mxu0 }
 0x124   :  { %4180 = vmatpush3.bf16.msra.mxu1 %v4780_v32  ;;  %v330_v40 = vadd.f32 %v4812_v38, %v4908_v43  ;;  %v335_v43 = vadd.f32 %v4906_v42, %v4812_v38 }
 0x125   :  { %4181 = vmatprep.subr.bf16.mxu1 %v4636_v1 }
 0x126   :  { %v4910_v44 = vpop.f32.mrb[16].mxu0 }
 0x127   :  { %v4912_v45 = vpop.f32.mrb[17].mxu0 }
 0x128   :  { %v340_v42 = vadd.f32 %v4812_v38, %v4912_v45  ;;  %v345_v45 = vadd.f32 %v4910_v44, %v4812_v38 }
 0x1ea   :  { %v594_v47 = vpop.f32.mrb[2].mxu1 }
 0x1eb   :  { %v598_v48 = vadd.f32 %v594_v47, %v265_v46  ;;  %v3539_v49 = vpop.f32.mrb[3].mxu1  ;;  %v4914_v46 = vpop.f32.mrb[18].mxu0 }
 0x1ec   :  { %v4916_v47 = vpop.f32.mrb[19].mxu0 }
 0x1ed   :  { %4544 = vtanh.f32 %v598_v48  ;;  %v4918_v48 = vpop.f32.mrb[20].mxu0  ;;  %v350_v44 = vadd.f32 %v4812_v38, %v4916_v47  ;;  %v355_v47 = vadd.f32 %v4914_v46, %v4812_v38 }
 0x1ee   :  { %v4920_v49 = vpop.f32.mrb[21].mxu0 }
 0x1ef   :  { %v360_v46 = vadd.f32 %v4812_v38, %v4920_v49  ;;  %v365_v49 = vadd.f32 %v4918_v48, %v4812_v38 }
 0x1f7   :  { %v4545_v50 = vpop.eup %4544 }
 0x1f8   :  { %3557 = vmatmul.mubr.msk.f32.vlgmr.msra.gmra.mrb[4].mxu1 %vm447_vm3, %v4545_v50  ;;  %v4922_v50 = vpop.f32.mrb[22].mxu0 }
 0x1f9   :  { %4183 = vmatpush3.bf16.msra.mxu1 %v4732_v13  ;;  %3575 = vmatprep.mubr.msk.f32.mxu1 %vm4637_vm0, %v4638_v2  ;;  %v4924_v51 = vpop.f32.mrb[23].mxu0 }
 0x1fa   :  { %4184 = vmatprep.subr.bf16.mxu1 %v4636_v1  ;;  %v370_v48 = vadd.f32 %v4812_v38, %v4924_v51  ;;  %v375_v51 = vadd.f32 %v4922_v50, %v4812_v38 }
 0x1fd   :  { %4186 = vmatpush3.bf16.msra.mxu1 %v4747_v19 }
 0x1fe   :  { %4187 = vmatprep.subr.bf16.mxu1 %v4636_v1 }
 0x201   :  { %4189 = vmatpush3.bf16.msra.mxu1 %v4764_v26 }
 0x202   :  { %4190 = vmatprep.subr.bf16.mxu1 %v4636_v1 }
 0x205   :  { %4192 = vmatpush3.bf16.msra.mxu1 %v4780_v32 }
 0x206   :  { %4193 = vmatprep.subr.bf16.mxu1 %v4636_v1 }
 0x2cb   :  { %v671_v54 = vpop.f32.mrb[4].mxu1 }
 0x2cc   :  { %v675_v55 = vadd.f32 %v671_v54, %v270_v53  ;;  %v3558_v56 = vpop.f32.mrb[5].mxu1 }
 0x2ce   :  { %4546 = vtanh.f32 %v675_v55 }
 0x2d8   :  { %v4547_v57 = vpop.eup %4546 }
 0x2d9   :  { %3576 = vmatmul.mubr.msk.f32.vlgmr.msra.gmra.mrb[6].mxu1 %vm447_vm3, %v4547_v57  ;;  %v4938_v57 = vpop.f32.mrb[24].mxu0 }
 0x2da   :  { %4195 = vmatpush3.bf16.msra.mxu1 %v4732_v13  ;;  %3594 = vmatprep.mubr.msk.f32.mxu1 %vm4637_vm0, %v4638_v2  ;;  %v4940_v58 = vpop.f32.mrb[25].mxu0 }
 0x2db   :  { %4196 = vmatprep.subr.bf16.mxu1 %v4636_v1  ;;  %v4942_v59 = vpop.f32.mrb[26].mxu0  ;;  %v380_v50 = vadd.f32 %v4812_v38, %v4940_v58  ;;  %v385_v58 = vadd.f32 %v4938_v57, %v4812_v38 }
 0x2dc   :  { %v4944_v60 = vpop.f32.mrb[27].mxu0 }
 0x2dd   :  { %v3501_v61 = vpop.f32.mrb[28].mxu0  ;;  %v390_v57 = vadd.f32 %v4812_v38, %v4944_v60 }
 0x2de   :  { %4198 = vmatpush3.bf16.msra.mxu1 %v4747_v19  ;;  %v4947_v62 = vadd.f32 %v3501_v61, %v4812_v38  ;;  %v4949_v63 = vpop.f32.mrb[29].mxu0 }
 0x2df   :  { %4199 = vmatprep.subr.bf16.mxu1 %v4636_v1 }
 0x2e2   :  { %4201 = vmatpush3.bf16.msra.mxu1 %v4764_v26 }
 0x2e3   :  { %4202 = vmatprep.subr.bf16.mxu1 %v4636_v1 }
 0x2e6   :  { %4204 = vmatpush3.bf16.msra.mxu1 %v4780_v32 }
 0x2e7   :  { %4217 = vmatprep.subr.bf16.mxu1 %v4636_v1 }
 0x3ac   :  { %v748_v20 = vpop.f32.mrb[6].mxu1 }
 0x3ad   :  { %v752_v21 = vadd.f32 %v748_v20, %v275_v18  ;;  %v3577_v22 = vpop.f32.mrb[7].mxu1  ;;  %v300_v20 = vadd.f32 %v4812_v38, %v4896_v36 }
 0x3af   :  { %4548 = vtanh.f32 %v752_v21 }
 0x3b9   :  { %v4549_v23 = vpop.eup %4548 }
 0x3ba   :  { %3595 = vmatmul.mubr.msk.f32.vlgmr.msra.gmra.mrb[8].mxu1 %vm447_vm3, %v4549_v23 }
 0x3bb   :  { %4219 = vmatpush3.bf16.msra.mxu1 %v4732_v13  ;;  %3632 = vmatprep.mubr.msk.f32.mxu1 %vm4637_vm0, %v4638_v2 }
 0x3bc   :  { %4220 = vmatprep.subr.bf16.mxu1 %v4636_v1 }
 0x3bf   :  { %4222 = vmatpush3.bf16.msra.mxu1 %v4747_v19 }
 0x3c0   :  { %4223 = vmatprep.subr.bf16.mxu1 %v4636_v1 }
 0x3c3   :  { %4225 = vmatpush3.bf16.msra.mxu1 %v4764_v26 }
 0x3c4   :  { %4226 = vmatprep.subr.bf16.mxu1 %v4636_v1 }
 0x3c7   :  { %4228 = vmatpush3.bf16.msra.mxu1 %v4780_v32 }
 0x3c8   :  { %4241 = vmatprep.subr.bf16.mxu1 %v4636_v1 }
 0x48d   :  { %v825_v53 = vpop.f32.mrb[8].mxu1 }
 0x48e   :  { %v829_v54 = vadd.f32 %v825_v53, %v280_v52  ;;  %v3596_v55 = vpop.f32.mrb[9].mxu1 }
 0x490   :  { %4550 = vtanh.f32 %v829_v54 }
 0x491   :  { %4552 = vtanh.f32 %v4947_v62 }
 0x49a   :  { %v4551_v56 = vpop.eup %4550 }
 0x49b   :  { %3614 = vmatmul.mubr.msk.f32.vlgmr.msra.gmra.mrb[30].mxu0 %vm447_vm3, %v4551_v56  ;;  %v4553_v0 = vpop.eup %4552 }
 0x49c   :  { %4231 = vmatpush3.bf16.msra.mxu0 %v4732_v13  ;;  %3651 = vmatprep.mubr.msk.f32.mxu0 %vm4637_vm0, %v4638_v2 }
 0x49d   :  { %4232 = vmatprep.subr.bf16.mxu0 %v4636_v1  ;;  %2774 = vrot.lane.b32.xlu0 %v4553_v0, %s4639_s20 }
 0x4a0   :  { %4234 = vmatpush3.bf16.msra.mxu0 %v4747_v19 }
 0x4a1   :  { %4235 = vmatprep.subr.bf16.mxu0 %v4636_v1 }
 0x4a4   :  { %4237 = vmatpush3.bf16.msra.mxu0 %v4764_v26 }
 0x4a5   :  { %4238 = vmatprep.subr.bf16.mxu0 %v4636_v1 }
 0x4a8   :  { %4240 = vmatpush3.bf16.msra.mxu0 %v4780_v32 }
 0x4a9   :  { %4253 = vmatprep.subr.bf16.mxu0 %v4636_v1 }
 0x56e   :  { %v902_v4 = vpop.f32.mrb[30].mxu0 }
 0x56f   :  { %v906_v5 = vadd.f32 %v902_v4, %v285_v3  ;;  %v3615_v6 = vpop.f32.mrb[31].mxu0 }
 0x571   :  { %4554 = vtanh.f32 %v906_v5 }
 0x57b   :  { %v4555_v7 = vpop.eup %4554 }
 0x57c   :  { %3633 = vmatmul.mubr.msk.f32.vlgmr.msra.gmra.mrb[10].mxu1 %vm447_vm3, %v4555_v7 }
 0x57d   :  { %4243 = vmatpush3.bf16.msra.mxu1 %v4732_v13  ;;  %3670 = vmatprep.mubr.msk.f32.mxu1 %vm4637_vm0, %v4638_v2 }
 0x57e   :  { %4244 = vmatprep.subr.bf16.mxu1 %v4636_v1 }
 0x581   :  { %4246 = vmatpush3.bf16.msra.mxu1 %v4747_v19 }
 0x582   :  { %4247 = vmatprep.subr.bf16.mxu1 %v4636_v1 }
 0x585   :  { %4249 = vmatpush3.bf16.msra.mxu1 %v4764_v26 }
 0x586   :  { %4250 = vmatprep.subr.bf16.mxu1 %v4636_v1 }
 0x589   :  { %4252 = vmatpush3.bf16.msra.mxu1 %v4780_v32 }
 0x58a   :  { %4265 = vmatprep.subr.bf16.mxu1 %v4636_v1 }
 0x64f   :  { %v979_v9 = vpop.f32.mrb[10].mxu1 }
 0x650   :  { %v983_v10 = vadd.f32 %v979_v9, %v290_v8  ;;  %v3634_v11 = vpop.f32.mrb[11].mxu1 }
 0x652   :  { %4556 = vtanh.f32 %v983_v10 }
 0x65c   :  { %v4557_v12 = vpop.eup %4556 }
 0x65d   :  { %3652 = vmatmul.mubr.msk.f32.vlgmr.msra.gmra.mrb[32].mxu0 %vm447_vm3, %v4557_v12 }
 0x65e   :  { %4255 = vmatpush3.bf16.msra.mxu0 %v4732_v13  ;;  %3689 = vmatprep.mubr.msk.f32.mxu0 %vm4637_vm0, %v4638_v2 }
 0x65f   :  { %4256 = vmatprep.subr.bf16.mxu0 %v4636_v1 }
 0x662   :  { %4258 = vmatpush3.bf16.msra.mxu0 %v4747_v19 }
 0x663   :  { %4259 = vmatprep.subr.bf16.mxu0 %v4636_v1 }
 0x666   :  { %4261 = vmatpush3.bf16.msra.mxu0 %v4764_v26 }
 0x667   :  { %4262 = vmatprep.subr.bf16.mxu0 %v4636_v1 }
 0x66a   :  { %4264 = vmatpush3.bf16.msra.mxu0 %v4780_v32 }
 0x66b   :  { %4277 = vmatprep.subr.bf16.mxu0 %v4636_v1 }
 0x730   :  { %v1056_v15 = vpop.f32.mrb[32].mxu0 }
 0x731   :  { %v1060_v16 = vadd.f32 %v1056_v15, %v295_v14  ;;  %v3653_v17 = vpop.f32.mrb[33].mxu0 }
 0x733   :  { %4558 = vtanh.f32 %v1060_v16 }
 0x73d   :  { %v4559_v18 = vpop.eup %4558 }
 0x73e   :  { %3671 = vmatmul.mubr.msk.f32.vlgmr.msra.gmra.mrb[12].mxu1 %vm447_vm3, %v4559_v18 }
 0x73f   :  { %4267 = vmatpush3.bf16.msra.mxu1 %v4732_v13  ;;  %3708 = vmatprep.mubr.msk.f32.mxu1 %vm4637_vm0, %v4638_v2 }
 0x740   :  { %4268 = vmatprep.subr.bf16.mxu1 %v4636_v1 }
 0x743   :  { %4270 = vmatpush3.bf16.msra.mxu1 %v4747_v19 }
 0x744   :  { %4271 = vmatprep.subr.bf16.mxu1 %v4636_v1 }
 0x747   :  { %4273 = vmatpush3.bf16.msra.mxu1 %v4764_v26 }
 0x748   :  { %4274 = vmatprep.subr.bf16.mxu1 %v4636_v1 }
 0x74b   :  { %4276 = vmatpush3.bf16.msra.mxu1 %v4780_v32 }
 0x74c   :  { %4289 = vmatprep.subr.bf16.mxu1 %v4636_v1 }
 0x811   :  { %v1133_v21 = vpop.f32.mrb[12].mxu1 }
 0x812   :  { %v1137_v22 = vadd.f32 %v1133_v21, %v300_v20  ;;  %v3672_v23 = vpop.f32.mrb[13].mxu1 }
 0x814   :  { %4560 = vtanh.f32 %v1137_v22 }
 0x81e   :  { %v4561_v24 = vpop.eup %4560 }
 0x81f   :  { %3690 = vmatmul.mubr.msk.f32.vlgmr.msra.gmra.mrb[34].mxu0 %vm447_vm3, %v4561_v24 }
 0x820   :  { %4279 = vmatpush3.bf16.msra.mxu0 %v4732_v13  ;;  %3727 = vmatprep.mubr.msk.f32.mxu0 %vm4637_vm0, %v4638_v2 }
 0x821   :  { %4280 = vmatprep.subr.bf16.mxu0 %v4636_v1 }
 0x824   :  { %4282 = vmatpush3.bf16.msra.mxu0 %v4747_v19 }
 0x825   :  { %4283 = vmatprep.subr.bf16.mxu0 %v4636_v1 }
 0x828   :  { %4285 = vmatpush3.bf16.msra.mxu0 %v4764_v26 }
 0x829   :  { %4286 = vmatprep.subr.bf16.mxu0 %v4636_v1 }
 0x82c   :  { %4288 = vmatpush3.bf16.msra.mxu0 %v4780_v32 }
 0x82d   :  { %4301 = vmatprep.subr.bf16.mxu0 %v4636_v1 }
 0x8f2   :  { %v1210_v27 = vpop.f32.mrb[34].mxu0 }
 0x8f3   :  { %v1214_v28 = vadd.f32 %v1210_v27, %v305_v25  ;;  %v3691_v29 = vpop.f32.mrb[35].mxu0 }
 0x8f5   :  { %4562 = vtanh.f32 %v1214_v28 }
 0x8ff   :  { %v4563_v30 = vpop.eup %4562 }
 0x900   :  { %3709 = vmatmul.mubr.msk.f32.vlgmr.msra.gmra.mrb[14].mxu1 %vm447_vm3, %v4563_v30 }
 0x901   :  { %4291 = vmatpush3.bf16.msra.mxu1 %v4732_v13  ;;  %3746 = vmatprep.mubr.msk.f32.mxu1 %vm4637_vm0, %v4638_v2 }
 0x902   :  { %4292 = vmatprep.subr.bf16.mxu1 %v4636_v1 }
 0x905   :  { %4294 = vmatpush3.bf16.msra.mxu1 %v4747_v19 }
 0x906   :  { %4295 = vmatprep.subr.bf16.mxu1 %v4636_v1 }
 0x909   :  { %4297 = vmatpush3.bf16.msra.mxu1 %v4764_v26 }
 0x90a   :  { %4298 = vmatprep.subr.bf16.mxu1 %v4636_v1 }
 0x90d   :  { %4300 = vmatpush3.bf16.msra.mxu1 %v4780_v32 }
 0x90e   :  { %4313 = vmatprep.subr.bf16.mxu1 %v4636_v1 }
 0x9d3   :  { %v1287_v33 = vpop.f32.mrb[14].mxu1 }
 0x9d4   :  { %v1291_v34 = vadd.f32 %v1287_v33, %v310_v31  ;;  %v3710_v35 = vpop.f32.mrb[15].mxu1 }
 0x9d6   :  { %4564 = vtanh.f32 %v1291_v34 }
 0x9e0   :  { %v4565_v36 = vpop.eup %4564 }
 0x9e1   :  { %3728 = vmatmul.mubr.msk.f32.vlgmr.msra.gmra.mrb[36].mxu0 %vm447_vm3, %v4565_v36 }
 0x9e2   :  { %4303 = vmatpush3.bf16.msra.mxu0 %v4732_v13  ;;  %3765 = vmatprep.mubr.msk.f32.mxu0 %vm4637_vm0, %v4638_v2 }
 0x9e3   :  { %4304 = vmatprep.subr.bf16.mxu0 %v4636_v1 }
 0x9e6   :  { %4306 = vmatpush3.bf16.msra.mxu0 %v4747_v19 }
 0x9e7   :  { %4307 = vmatprep.subr.bf16.mxu0 %v4636_v1 }
 0x9ea   :  { %4309 = vmatpush3.bf16.msra.mxu0 %v4764_v26 }
 0x9eb   :  { %4310 = vmatprep.subr.bf16.mxu0 %v4636_v1 }
 0x9ee   :  { %4312 = vmatpush3.bf16.msra.mxu0 %v4780_v32 }
 0x9ef   :  { %4325 = vmatprep.subr.bf16.mxu0 %v4636_v1 }
 0xab4   :  { %v1364_v52 = vpop.f32.mrb[36].mxu0 }
 0xab5   :  { %v1368_v53 = vadd.f32 %v1364_v52, %v315_v39  ;;  %v3729_v54 = vpop.f32.mrb[37].mxu0 }
 0xab7   :  { %4566 = vtanh.f32 %v1368_v53 }
 0xac1   :  { %v4567_v55 = vpop.eup %4566 }
 0xac2   :  { %3747 = vmatmul.mubr.msk.f32.vlgmr.msra.gmra.mrb[16].mxu1 %vm447_vm3, %v4567_v55 }
 0xac3   :  { %4315 = vmatpush3.bf16.msra.mxu1 %v4732_v13  ;;  %3784 = vmatprep.mubr.msk.f32.mxu1 %vm4637_vm0, %v4638_v2 }
 0xac4   :  { %4316 = vmatprep.subr.bf16.mxu1 %v4636_v1 }
 0xac7   :  { %4318 = vmatpush3.bf16.msra.mxu1 %v4747_v19 }
 0xac8   :  { %4319 = vmatprep.subr.bf16.mxu1 %v4636_v1 }
 0xacb   :  { %4321 = vmatpush3.bf16.msra.mxu1 %v4764_v26 }
 0xacc   :  { %4322 = vmatprep.subr.bf16.mxu1 %v4636_v1 }
 0xacf   :  { %4324 = vmatpush3.bf16.msra.mxu1 %v4780_v32 }
 0xad0   :  { %4337 = vmatprep.subr.bf16.mxu1 %v4636_v1 }
 0xb95   :  { %v1441_v56 = vpop.f32.mrb[16].mxu1 }
 0xb96   :  { %v1445_v61 = vadd.f32 %v1441_v56, %v320_v37  ;;  %v3748_v0 = vpop.f32.mrb[17].mxu1 }
 0xb98   :  { %4568 = vtanh.f32 %v1445_v61 }
 0xba2   :  { %v4569_v3 = vpop.eup %4568 }
 0xba3   :  { %3766 = vmatmul.mubr.msk.f32.vlgmr.msra.gmra.mrb[38].mxu0 %vm447_vm3, %v4569_v3 }
 0xba4   :  { %4327 = vmatpush3.bf16.msra.mxu0 %v4732_v13  ;;  %3803 = vmatprep.mubr.msk.f32.mxu0 %vm4637_vm0, %v4638_v2 }
 0xba5   :  { %4328 = vmatprep.subr.bf16.mxu0 %v4636_v1 }
 0xba8   :  { %4330 = vmatpush3.bf16.msra.mxu0 %v4747_v19 }
 0xba9   :  { %4331 = vmatprep.subr.bf16.mxu0 %v4636_v1 }
 0xbac   :  { %4333 = vmatpush3.bf16.msra.mxu0 %v4764_v26 }
 0xbad   :  { %4334 = vmatprep.subr.bf16.mxu0 %v4636_v1 }
 0xbb0   :  { %4336 = vmatpush3.bf16.msra.mxu0 %v4780_v32 }
 0xbb1   :  { %4349 = vmatprep.subr.bf16.mxu0 %v4636_v1 }
 0xc76   :  { %v1518_v4 = vpop.f32.mrb[38].mxu0 }
 0xc77   :  { %v1522_v5 = vadd.f32 %v1518_v4, %v325_v41  ;;  %v3767_v6 = vpop.f32.mrb[39].mxu0 }
 0xc79   :  { %4570 = vtanh.f32 %v1522_v5 }
 0xc83   :  { %v4571_v7 = vpop.eup %4570 }
 0xc84   :  { %3785 = vmatmul.mubr.msk.f32.vlgmr.msra.gmra.mrb[18].mxu1 %vm447_vm3, %v4571_v7 }
 0xc85   :  { %4339 = vmatpush3.bf16.msra.mxu1 %v4732_v13  ;;  %3822 = vmatprep.mubr.msk.f32.mxu1 %vm4637_vm0, %v4638_v2 }
 0xc86   :  { %4340 = vmatprep.subr.bf16.mxu1 %v4636_v1 }
 0xc89   :  { %4342 = vmatpush3.bf16.msra.mxu1 %v4747_v19 }
 0xc8a   :  { %4343 = vmatprep.subr.bf16.mxu1 %v4636_v1 }
 0xc8d   :  { %4345 = vmatpush3.bf16.msra.mxu1 %v4764_v26 }
 0xc8e   :  { %4346 = vmatprep.subr.bf16.mxu1 %v4636_v1 }
 0xc91   :  { %4348 = vmatpush3.bf16.msra.mxu1 %v4780_v32 }
 0xc92   :  { %4361 = vmatprep.subr.bf16.mxu1 %v4636_v1 }
 0xd57   :  { %v1595_v8 = vpop.f32.mrb[18].mxu1 }
 0xd58   :  { %v1599_v9 = vadd.f32 %v1595_v8, %v330_v40  ;;  %v3786_v10 = vpop.f32.mrb[19].mxu1 }
 0xd5a   :  { %4572 = vtanh.f32 %v1599_v9 }
 0xd64   :  { %v4573_v11 = vpop.eup %4572 }
 0xd65   :  { %3804 = vmatmul.mubr.msk.f32.vlgmr.msra.gmra.mrb[40].mxu0 %vm447_vm3, %v4573_v11 }
 0xd66   :  { %4351 = vmatpush3.bf16.msra.mxu0 %v4732_v13  ;;  %3841 = vmatprep.mubr.msk.f32.mxu0 %vm4637_vm0, %v4638_v2 }
 0xd67   :  { %4352 = vmatprep.subr.bf16.mxu0 %v4636_v1 }
 0xd6a   :  { %4354 = vmatpush3.bf16.msra.mxu0 %v4747_v19 }
 0xd6b   :  { %4355 = vmatprep.subr.bf16.mxu0 %v4636_v1 }
 0xd6e   :  { %4357 = vmatpush3.bf16.msra.mxu0 %v4764_v26 }
 0xd6f   :  { %4358 = vmatprep.subr.bf16.mxu0 %v4636_v1 }
 0xd72   :  { %4360 = vmatpush3.bf16.msra.mxu0 %v4780_v32 }
 0xd73   :  { %4373 = vmatprep.subr.bf16.mxu0 %v4636_v1 }
 0xe38   :  { %v1672_v12 = vpop.f32.mrb[40].mxu0 }
 0xe39   :  { %v1676_v14 = vadd.f32 %v1672_v12, %v335_v43  ;;  %v3805_v15 = vpop.f32.mrb[41].mxu0 }
 0xe3b   :  { %4574 = vtanh.f32 %v1676_v14 }
 0xe45   :  { %v4575_v16 = vpop.eup %4574 }
 0xe46   :  { %3823 = vmatmul.mubr.msk.f32.vlgmr.msra.gmra.mrb[20].mxu1 %vm447_vm3, %v4575_v16 }
 0xe47   :  { %4363 = vmatpush3.bf16.msra.mxu1 %v4732_v13  ;;  %3860 = vmatprep.mubr.msk.f32.mxu1 %vm4637_vm0, %v4638_v2 }
 0xe48   :  { %4364 = vmatprep.subr.bf16.mxu1 %v4636_v1 }
 0xe4b   :  { %4366 = vmatpush3.bf16.msra.mxu1 %v4747_v19 }
 0xe4c   :  { %4367 = vmatprep.subr.bf16.mxu1 %v4636_v1 }
 0xe4f   :  { %4369 = vmatpush3.bf16.msra.mxu1 %v4764_v26 }
 0xe50   :  { %4370 = vmatprep.subr.bf16.mxu1 %v4636_v1 }
 0xe53   :  { %4372 = vmatpush3.bf16.msra.mxu1 %v4780_v32 }
 0xe54   :  { %4385 = vmatprep.subr.bf16.mxu1 %v4636_v1 }
 0xf19   :  { %v1749_v17 = vpop.f32.mrb[20].mxu1 }
 0xf1a   :  { %v1753_v18 = vadd.f32 %v1749_v17, %v340_v42  ;;  %v3824_v20 = vpop.f32.mrb[21].mxu1 }
 0xf1c   :  { %4576 = vtanh.f32 %v1753_v18 }
 0xf26   :  { %v4577_v21 = vpop.eup %4576 }
 0xf27   :  { %3842 = vmatmul.mubr.msk.f32.vlgmr.msra.gmra.mrb[42].mxu0 %vm447_vm3, %v4577_v21  ;;  %v2767_v21 = vld [vmem:[%s5331_s5 + $0x10] sm:$0xff] }
 0xf28   :  { %4375 = vmatpush3.bf16.msra.mxu0 %v4732_v13  ;;  %3879 = vmatprep.mubr.msk.f32.mxu0 %vm4637_vm0, %v4638_v2 }
 0xf29   :  { %4376 = vmatprep.subr.bf16.mxu0 %v4636_v1 }
 0xf2c   :  { %4378 = vmatpush3.bf16.msra.mxu0 %v4747_v19 }
 0xf2d   :  { %4379 = vmatprep.subr.bf16.mxu0 %v4636_v1 }
 0xf30   :  { %4381 = vmatpush3.bf16.msra.mxu0 %v4764_v26 }
 0xf31   :  { %4382 = vmatprep.subr.bf16.mxu0 %v4636_v1 }
 0xf34   :  { %4384 = vmatpush3.bf16.msra.mxu0 %v4780_v32 }
 0xf35   :  { %4397 = vmatprep.subr.bf16.mxu0 %v4636_v1 }
 0xffa   :  { %v1826_v22 = vpop.f32.mrb[42].mxu0 }
 0xffb   :  { %v1830_v23 = vadd.f32 %v1826_v22, %v345_v45  ;;  %v3843_v24 = vpop.f32.mrb[43].mxu0 }
 0xffc   :  { %v2770_v24 = vld [vmem:[%s5331_s5 + $0x28] sm:$0xff] }
 0xffd   :  { %4578 = vtanh.f32 %v1830_v23  ;;  %v2769_v23 = vld [vmem:[%s5331_s5 + $0x20] sm:$0xff] }
0x1007   :  { %v4579_v25 = vpop.eup %4578 }
0x1008   :  { %3861 = vmatmul.mubr.msk.f32.vlgmr.msra.gmra.mrb[22].mxu1 %vm447_vm3, %v4579_v25  ;;  %v4512_v25 = vpack.c.bf16 %v2770_v24, %v2769_v23 }
0x1009   :  { %4387 = vmatpush3.bf16.msra.mxu1 %v4732_v13  ;;  %3898 = vmatprep.mubr.msk.f32.mxu1 %vm4637_vm0, %v4638_v2 }
0x100a   :  { %4388 = vmatprep.subr.bf16.mxu1 %v4636_v1 }
0x100d   :  { %4390 = vmatpush3.bf16.msra.mxu1 %v4747_v19 }
0x100e   :  { %4391 = vmatprep.subr.bf16.mxu1 %v4636_v1 }
0x1011   :  { %4393 = vmatpush3.bf16.msra.mxu1 %v4764_v26 }
0x1012   :  { %4394 = vmatprep.subr.bf16.mxu1 %v4636_v1 }
0x1015   :  { %4396 = vmatpush3.bf16.msra.mxu1 %v4780_v32 }
0x1016   :  { %4409 = vmatprep.subr.bf16.mxu1 %v4636_v1 }
0x10db   :  { %v1903_v27 = vpop.f32.mrb[22].mxu1 }
0x10dc   :  { %v1907_v28 = vadd.f32 %v1903_v27, %v350_v44  ;;  %v3862_v29 = vpop.f32.mrb[23].mxu1  ;;  %v2771_v44 = vld [vmem:[%s5331_s5 + $0x30] sm:$0xff]  ;;  %v2772_v27 = vld [vmem:[%s5331_s5 + $0x38] sm:$0xff] }
0x10dd   :  { %v2775_v29 = vpop.permute.xlu0 %2774 }
0x10de   :  { %4580 = vtanh.f32 %v1907_v28  ;;  %v4515_v28 = vpack.c.bf16 %v2772_v27, %v2771_v44 }
0x10e8   :  { %v4581_v30 = vpop.eup %4580 }
0x10e9   :  { %3880 = vmatmul.mubr.msk.f32.vlgmr.msra.gmra.mrb[44].mxu0 %vm447_vm3, %v4581_v30 }
0x10ea   :  { %4399 = vmatpush3.bf16.msra.mxu0 %v4732_v13  ;;  %3917 = vmatprep.mubr.msk.f32.mxu0 %vm4637_vm0, %v4638_v2 }
0x10eb   :  { %4400 = vmatprep.subr.bf16.mxu0 %v4636_v1 }
0x10ee   :  { %4402 = vmatpush3.bf16.msra.mxu0 %v4747_v19 }
0x10ef   :  { %4403 = vmatprep.subr.bf16.mxu0 %v4636_v1 }
0x10f2   :  { %4405 = vmatpush3.bf16.msra.mxu0 %v4764_v26 }
0x10f3   :  { %4406 = vmatprep.subr.bf16.mxu0 %v4636_v1 }
0x10f6   :  { %4408 = vmatpush3.bf16.msra.mxu0 %v4780_v32 }
0x10f7   :  { %4421 = vmatprep.subr.bf16.mxu0 %v4636_v1 }
0x11bc   :  { %v1980_v31 = vpop.f32.mrb[44].mxu0 }
0x11bd   :  { %v1984_v33 = vadd.f32 %v1980_v31, %v355_v47  ;;  %v3881_v34 = vpop.f32.mrb[45].mxu0 }
0x11be   :  { %v2757_v34 = vld [vmem:[%s5330_s4] sm:$0xff] }
0x11bf   :  { %4582 = vtanh.f32 %v1984_v33 }
0x11c9   :  { %v4583_v35 = vpop.eup %4582 }
0x11ca   :  { %3899 = vmatmul.mubr.msk.f32.vlgmr.msra.gmra.mrb[24].mxu1 %vm447_vm3, %v4583_v35  ;;  %v2758_v35 = vld [vmem:[%s5330_s4 + $0x8] sm:$0xff] }
0x11cb   :  { %4411 = vmatpush3.bf16.msra.mxu1 %v4732_v13  ;;  %3936 = vmatprep.mubr.msk.f32.mxu1 %vm4637_vm0, %v4638_v2 }
0x11cc   :  { %4412 = vmatprep.subr.bf16.mxu1 %v4636_v1 }
0x11cf   :  { %4414 = vmatpush3.bf16.msra.mxu1 %v4747_v19 }
0x11d0   :  { %4415 = vmatprep.subr.bf16.mxu1 %v4636_v1 }
0x11d3   :  { %4417 = vmatpush3.bf16.msra.mxu1 %v4764_v26 }
0x11d4   :  { %4418 = vmatprep.subr.bf16.mxu1 %v4636_v1 }
0x11d7   :  { %4420 = vmatpush3.bf16.msra.mxu1 %v4780_v32 }
0x11d8   :  { %4433 = vmatprep.subr.bf16.mxu1 %v4636_v1 }
0x129d   :  { %v2057_v36 = vpop.f32.mrb[24].mxu1 }
0x129e   :  { %v2061_v39 = vadd.f32 %v2057_v36, %v360_v46  ;;  %v3900_v52 = vpop.f32.mrb[25].mxu1  ;;  %v4518_v46 = vpack.c.bf16 %v2758_v35, %v2757_v34 }
0x129f   :  { %v2759_v52 = vld [vmem:[%s5330_s4 + $0x10] sm:$0xff] }
0x12a0   :  { %4584 = vtanh.f32 %v2061_v39 }
0x12aa   :  { %v4585_v53 = vpop.eup %4584 }
0x12ab   :  { %3918 = vmatmul.mubr.msk.f32.vlgmr.msra.gmra.mrb[46].mxu0 %vm447_vm3, %v4585_v53  ;;  %v2760_v53 = vld [vmem:[%s5330_s4 + $0x18] sm:$0xff] }
0x12ac   :  { %4423 = vmatpush3.bf16.msra.mxu0 %v4732_v13  ;;  %3955 = vmatprep.mubr.msk.f32.mxu0 %vm4637_vm0, %v4638_v2 }
0x12ad   :  { %4424 = vmatprep.subr.bf16.mxu0 %v4636_v1 }
0x12b0   :  { %4426 = vmatpush3.bf16.msra.mxu0 %v4747_v19 }
0x12b1   :  { %4427 = vmatprep.subr.bf16.mxu0 %v4636_v1 }
0x12b4   :  { %4429 = vmatpush3.bf16.msra.mxu0 %v4764_v26 }
0x12b5   :  { %4430 = vmatprep.subr.bf16.mxu0 %v4636_v1 }
0x12b8   :  { %4432 = vmatpush3.bf16.msra.mxu0 %v4780_v32 }
0x12b9   :  { %4445 = vmatprep.subr.bf16.mxu0 %v4636_v1 }
0x137e   :  { %v2134_v54 = vpop.f32.mrb[46].mxu0 }
0x137f   :  { %v2138_v55 = vadd.f32 %v2134_v54, %v365_v49  ;;  %v3919_v37 = vpop.f32.mrb[47].mxu0  ;;  %v4521_v49 = vpack.c.bf16 %v2760_v53, %v2759_v52  ;;  %v2761_v54 = vld [vmem:[%s5330_s4 + $0x20] sm:$0xff] }
0x1380   :  { %v2763_v37 = vld [vmem:[%s5330_s4 + $0x30] sm:$0xff] }
0x1381   :  { %4586 = vtanh.f32 %v2138_v55 }
0x138b   :  { %v4587_v56 = vpop.eup %4586 }
0x138c   :  { %3937 = vmatmul.mubr.msk.f32.vlgmr.msra.gmra.mrb[26].mxu1 %vm447_vm3, %v4587_v56  ;;  %v2764_v56 = vld [vmem:[%s5330_s4 + $0x38] sm:$0xff] }
0x138d   :  { %4435 = vmatpush3.bf16.msra.mxu1 %v4732_v13  ;;  %3974 = vmatprep.mubr.msk.f32.mxu1 %vm4637_vm0, %v4638_v2 }
0x138e   :  { %4436 = vmatprep.subr.bf16.mxu1 %v4636_v1 }
0x1391   :  { %4438 = vmatpush3.bf16.msra.mxu1 %v4747_v19 }
0x1392   :  { %4439 = vmatprep.subr.bf16.mxu1 %v4636_v1 }
0x1395   :  { %4441 = vmatpush3.bf16.msra.mxu1 %v4764_v26 }
0x1396   :  { %4442 = vmatprep.subr.bf16.mxu1 %v4636_v1 }
0x1399   :  { %4444 = vmatpush3.bf16.msra.mxu1 %v4780_v32 }
0x139a   :  { %4457 = vmatprep.subr.bf16.mxu1 %v4636_v1 }
0x145f   :  { %v2211_v61 = vpop.f32.mrb[26].mxu1 }
0x1460   :  { %v2215_v0 = vadd.f32 %v2211_v61, %v370_v48  ;;  %v3938_v3 = vpop.f32.mrb[27].mxu1  ;;  %v4527_v48 = vpack.c.bf16 %v2764_v56, %v2763_v37 }
0x1462   :  { %4588 = vtanh.f32 %v2215_v0 }
0x146c   :  { %v4589_v41 = vpop.eup %4588 }
0x146d   :  { %3956 = vmatmul.mubr.msk.f32.vlgmr.msra.gmra.mrb[48].mxu0 %vm447_vm3, %v4589_v41 }
0x146e   :  { %4447 = vmatpush3.bf16.msra.mxu0 %v4732_v13  ;;  %3993 = vmatprep.mubr.msk.f32.mxu0 %vm4637_vm0, %v4638_v2 }
0x146f   :  { %4448 = vmatprep.subr.bf16.mxu0 %v4636_v1 }
0x1472   :  { %4450 = vmatpush3.bf16.msra.mxu0 %v4747_v19 }
0x1473   :  { %4451 = vmatprep.subr.bf16.mxu0 %v4636_v1 }
0x1476   :  { %4453 = vmatpush3.bf16.msra.mxu0 %v4764_v26 }
0x1477   :  { %4454 = vmatprep.subr.bf16.mxu0 %v4636_v1 }
0x147a   :  { %4456 = vmatpush3.bf16.msra.mxu0 %v4780_v32 }
0x147b   :  { %4469 = vmatprep.subr.bf16.mxu0 %v4636_v1 }
0x1540   :  { %v2288_v4 = vpop.f32.mrb[48].mxu0 }
0x1541   :  { %v2292_v5 = vadd.f32 %v2288_v4, %v375_v51  ;;  %v3957_v6 = vpop.f32.mrb[49].mxu0  ;;  %v2930_v51 = vld [vmem:[%s5333_s7] sm:$0xff]  ;;  %v2931_v4 = vld [vmem:[%s5333_s7 + $0x8] sm:$0xff] }
0x1542   :  { %v2933_v6 = vld [vmem:[%s5333_s7 + $0x18] sm:$0xff] }
0x1543   :  { %4590 = vtanh.f32 %v2292_v5  ;;  %v4530_v5 = vpack.c.bf16 %v2931_v4, %v2930_v51 }
0x154d   :  { %v4591_v7 = vpop.eup %4590 }
0x154e   :  { %3975 = vmatmul.mubr.msk.f32.vlgmr.msra.gmra.mrb[28].mxu1 %vm447_vm3, %v4591_v7 }
0x154f   :  { %4459 = vmatpush3.bf16.msra.mxu1 %v4732_v13  ;;  %4012 = vmatprep.mubr.msk.f32.mxu1 %vm4637_vm0, %v4638_v2 }
0x1550   :  { %4460 = vmatprep.subr.bf16.mxu1 %v4636_v1 }
0x1553   :  { %4462 = vmatpush3.bf16.msra.mxu1 %v4747_v19 }
0x1554   :  { %4463 = vmatprep.subr.bf16.mxu1 %v4636_v1 }
0x1557   :  { %4465 = vmatpush3.bf16.msra.mxu1 %v4764_v26 }
0x1558   :  { %4466 = vmatprep.subr.bf16.mxu1 %v4636_v1 }
0x155b   :  { %4468 = vmatpush3.bf16.msra.mxu1 %v4780_v32 }
0x155c   :  { %4481 = vmatprep.subr.bf16.mxu1 %v4636_v1 }
0x1621   :  { %v2365_v40 = vpop.f32.mrb[28].mxu1 }
0x1622   :  { %v2369_v8 = vadd.f32 %v2365_v40, %v380_v50  ;;  %v3976_v9 = vpop.f32.mrb[29].mxu1  ;;  %v3091_v40 = vld [vmem:[%s5332_s6] ss:$0 sm:$0xff] }
0x1624   :  { %4592 = vtanh.f32 %v2369_v8 }
0x162e   :  { %v4593_v10 = vpop.eup %4592 }
0x162f   :  { %3994 = vmatmul.mubr.msk.f32.vlgmr.msra.gmra.mrb[50].mxu0 %vm447_vm3, %v4593_v10 }
0x1630   :  { %4471 = vmatpush3.bf16.msra.mxu0 %v4732_v13  ;;  %4031 = vmatprep.mubr.msk.f32.mxu0 %vm4637_vm0, %v4638_v2 }
0x1631   :  { %4472 = vmatprep.subr.bf16.mxu0 %v4636_v1 }
0x1634   :  { %4474 = vmatpush3.bf16.msra.mxu0 %v4747_v19 }
0x1635   :  { %4475 = vmatprep.subr.bf16.mxu0 %v4636_v1 }
0x1638   :  { %4477 = vmatpush3.bf16.msra.mxu0 %v4764_v26 }
0x1639   :  { %4478 = vmatprep.subr.bf16.mxu0 %v4636_v1 }
0x163c   :  { %4480 = vmatpush3.bf16.msra.mxu0 %v4780_v32 }
0x163d   :  { %4493 = vmatprep.subr.bf16.mxu0 %v4636_v1 }
0x1702   :  { %v2442_v11 = vpop.f32.mrb[50].mxu0 }
0x1703   :  { %v2446_v43 = vadd.f32 %v2442_v11, %v385_v58  ;;  %v3995_v12 = vpop.f32.mrb[51].mxu0  ;;  %v3092_v58 = vld [vmem:[#allocation3] ss:$0 sm:$0xff] }
0x1705   :  { %4594 = vtanh.f32 %v2446_v43 }
0x170f   :  { %v4595_v14 = vpop.eup %4594 }
0x1710   :  { %4013 = vmatmul.mubr.msk.f32.vlgmr.msra.gmra.mrb[30].mxu1 %vm447_vm3, %v4595_v14 }
0x1711   :  { %4483 = vmatpush3.bf16.msra.mxu1 %v4732_v13  ;;  %4050 = vmatprep.mubr.msk.f32.mxu1 %vm4637_vm0, %v4638_v2 }
0x1712   :  { %4484 = vmatprep.subr.bf16.mxu1 %v4636_v1 }
0x1715   :  { %4486 = vmatpush3.bf16.msra.mxu1 %v4747_v19 }
0x1716   :  { %4487 = vmatprep.subr.bf16.mxu1 %v4636_v1 }
0x1719   :  { %4489 = vmatpush3.bf16.msra.mxu1 %v4764_v26 }
0x171a   :  { %4490 = vmatprep.subr.bf16.mxu1 %v4636_v1 }
0x171d   :  { %4492 = vmatpush3.bf16.msra.mxu1 %v4780_v32 }
0x171e   :  { %4505 = vmatprep.subr.bf16.mxu1 %v4636_v1 }
0x17e3   :  { %v2519_v15 = vpop.f32.mrb[30].mxu1 }
0x17e4   :  { %v2523_v16 = vadd.f32 %v2519_v15, %v390_v57  ;;  %v4014_v42 = vpop.f32.mrb[31].mxu1 }
0x17e6   :  { %4596 = vtanh.f32 %v2523_v16 }
0x17f0   :  { %v4597_v17 = vpop.eup %4596 }
0x17f1   :  { %4032 = vmatmul.mubr.msk.f32.vlgmr.msra.gmra.mrb[52].mxu0 %vm447_vm3, %v4597_v17 }
0x17f2   :  { %4495 = vmatpush3.bf16.msra.mxu0 %v4732_v13  ;;  %4069 = vmatprep.mubr.msk.f32.mxu0 %vm4637_vm0, %v4638_v2  ;;  %v4608_v13 = vld [vmem:[%s5328_s2] ss:$0 sm:$0xff] }
0x17f3   :  { %4496 = vmatprep.subr.bf16.mxu0 %v4636_v1  ;;  %v395_v38 = vadd.f32 %v4608_v13, %v4942_v59  ;;  %v2768_v59 = vld [vmem:[%s5331_s5 + $0x18] sm:$0xff]  ;;  %v400_v30 = vadd.f32 %v4608_v13, %v4949_v63 }
0x17f4   :  { %v4509_v22 = vpack.c.bf16 %v2768_v59, %v2767_v21 }
0x17f6   :  { %4498 = vmatpush3.bf16.msra.mxu0 %v4747_v19  ;;  %v2765_v19 = vld [vmem:[%s5331_s5] sm:$0xff] }
0x17f7   :  { %4499 = vmatprep.subr.bf16.mxu0 %v4636_v1 }
0x17fa   :  { %4501 = vmatpush3.bf16.msra.mxu0 %v4764_v26  ;;  %v2766_v26 = vld [vmem:[%s5331_s5 + $0x8] sm:$0xff] }
0x17fb   :  { %4502 = vmatprep.subr.bf16.mxu0 %v4636_v1 }
0x17fe   :  { %4504 = vmatpush3.bf16.msra.mxu0 %v4780_v32  ;;  %v4506_v32 = vpack.c.bf16 %v2766_v26, %v2765_v19 }
0x17ff   :  { %4517 = vmatprep.subr.bf16.mxu0 %v4636_v1 }
0x18c4   :  { %v2596_v60 = vpop.f32.mrb[52].mxu0 }
0x18c5   :  { %v2600_v18 = vadd.f32 %v2596_v60, %v395_v38  ;;  %v4033_v20 = vpop.f32.mrb[53].mxu0 }
0x18c7   :  { %4598 = vtanh.f32 %v2600_v18 }
0x18d1   :  { %v4599_v45 = vpop.eup %4598 }
0x18d2   :  { %4051 = vmatmul.mubr.msk.f32.vlgmr.msra.gmra.mrb[32].mxu1 %vm447_vm3, %v4599_v45 }
0x18d3   :  { %4507 = vmatpush3.bf16.msra.mxu1 %v4506_v32  ;;  %4088 = vmatprep.mubr.msk.f32.mxu1 %vm4637_vm0, %v4638_v2 }
0x18d4   :  { %4508 = vmatprep.subr.bf16.mxu1 %v4636_v1 }
0x18d7   :  { %4510 = vmatpush3.bf16.msra.mxu1 %v4509_v22 }
0x18d8   :  { %4511 = vmatprep.subr.bf16.mxu1 %v4636_v1 }
0x18db   :  { %4513 = vmatpush3.bf16.msra.mxu1 %v4512_v25 }
0x18dc   :  { %4514 = vmatprep.subr.bf16.mxu1 %v4636_v1 }
0x18df   :  { %4516 = vmatpush3.bf16.msra.mxu1 %v4515_v28 }
0x18e0   :  { %4529 = vmatprep.subr.bf16.mxu1 %v4636_v1 }
0x18e2   :  { %4089 = vmatmul.mubr.msk.f32.vlgmr.msra.gmra.mrb[34].mxu1 %vm447_vm3, %v2775_v29 }
0x18e3   :  { %4118 = vmatprep.mubr.msk.f32.mxu1 %vm4637_vm0, %v4638_v2  ;;  %4531 = vmatpush3.bf16.msra.mxu1 %v4530_v5 }
0x18e4   :  { %4532 = vmatprep.subr.bf16.mxu1 %v4636_v1 }
0x19a5   :  { %v2673_v47 = vpop.f32.mrb[32].mxu1 }
0x19a6   :  { %v2677_v31 = vadd.f32 %v2673_v47, %v400_v30  ;;  %v4052_v33 = vpop.f32.mrb[33].mxu1 }
0x19a8   :  { %4600 = vtanh.f32 %v2677_v31 }
0x19b2   :  { %v4601_v36 = vpop.eup %4600 }
0x19b3   :  { %4070 = vmatmul.mubr.msk.f32.vlgmr.msra.gmra.mrb[54].mxu0 %vm447_vm3, %v4601_v36 }
0x19b4   :  { %4519 = vmatpush3.bf16.msra.mxu0 %v4518_v46  ;;  %4107 = vmatprep.mubr.msk.f32.mxu0 %vm4637_vm0, %v4638_v2  ;;  %v2762_v2 = vld [vmem:[%s5330_s4 + $0x28] sm:$0xff] }
0x19b5   :  { %v2844_v63 = vpop.f32.mrb[34].mxu1  ;;  %4520 = vmatprep.subr.bf16.mxu0 %v4636_v1  ;;  %v4524_v55 = vpack.c.bf16 %v2762_v2, %v2761_v54 }
0x19b6   :  { %v4090_v39 = vpop.f32.mrb[35].mxu1 }
0x19b8   :  { %4522 = vmatpush3.bf16.msra.mxu0 %v4521_v49 }
0x19b9   :  { %4523 = vmatprep.subr.bf16.mxu0 %v4636_v1 }
0x19bc   :  { %4525 = vmatpush3.bf16.msra.mxu0 %v4524_v55 }
0x19bd   :  { %4526 = vmatprep.subr.bf16.mxu0 %v4636_v1 }
0x19c0   :  { %4528 = vmatpush3.bf16.msra.mxu0 %v4527_v48 }
0x1a86   :  { %v2750_v61 = vpop.f32.mrb[54].mxu0 }
0x1a87   :  { %v2754_v0 = vadd.f32 %v2750_v61, %v4947_v62  ;;  %v4071_v3 = vpop.f32.mrb[55].mxu0  ;;  %v2932_v62 = vld [vmem:[%s5333_s7 + $0x10] sm:$0xff] }
0x1a88   :  { %v4533_v7 = vpack.c.bf16 %v2933_v6, %v2932_v62 }
0x1a89   :  { %4602 = vtanh.f32 %v2754_v0 }
0x1a8a   :  { %4534 = vmatpush3.bf16.msra.mxu1 %v4533_v7 }
0x1a93   :  { %v4603_v41 = vpop.eup %4602 }
0x1a94   :  { %4108 = vmatmul.mubr.msk.f32.vlgmr.msra.gmra.mrb[56].mxu0 %vm447_vm3, %v4603_v41 }
0x1b67   :  { %v2917_v50 = vpop.f32.mrb[56].mxu0 }
0x1b68   :  { %v2918_v8 = vadd.f32 %v2917_v50, %v2844_v63  ;;  %v4109_v9 = vpop.f32.mrb[57].mxu0 }
0x1b6a   :  { %v2928_v10 = vadd.f32 %v3091_v40, %v2918_v8 }
0x1b6c   :  { %v2929_v1 = vmax.f32 %v2928_v10, 0.0 }
0x1b6e   :  { %4119 = vmatmul.mubr.msk.f32.vlgmr.msra.gmra.mrb[36].mxu1 %vm2941_vm4, %v2929_v1 }
0x1c41   :  { %v3011_v11 = vpop.f32.mrb[36].mxu1 }
0x1c42   :  { %v3012_v43 = vadd.f32 %v3092_v58, %v3011_v11  ;;  %v4120_v12 = vpop.f32.mrb[37].mxu1 }
0x1c44   :  { %v3094_v14 = vmul.f32 -1.442695, %v3012_v43 }
0x1c46   :  { %4604 = vpow2.f32 %v3094_v14 }
0x1c50   :  { %v4605_v57 = vpop.eup %4604 }
0x1c51   :  { %v3018_v15 = vadd.f32 1.0, %v4605_v57 }
0x1c53   :  { %4606 = vrcp.f32 %v3018_v15 }
0x1c5d   :  { %v4607_v16 = vpop.eup %4606 }
0x1c5e   :  { %3022 = vst.msk [vmem:[%s5335_s9] sm:$0xff] %vm3021_vm5, %v4607_v16 }
0x1c5f   :  { %3027 = vsyncpa [#allocation5], 1 }

</bundles_post_ra>
